<compile_context>
chip_gen: v5e
topology: v5e:2x2
jax: 0.10.0
libtpu: 0.0.40
codegen_flags: <defaults>
</compile_context>

<pallas_src>
import functools

import jax
import jax.numpy as jnp
from jax.experimental import pallas as pl
from jax.experimental.pallas import tpu as pltpu


# --------------------------------------------------------------------------
# Kernels
# --------------------------------------------------------------------------
def _ae_kernel(x_ref, w1t_ref, w2t_ref, w2_ref, w1_ref,
               b1_ref, b2_ref, b3_ref, b4_ref, out_ref):
    """One batch tile of the tied-weight autoencoder forward (exact path).

    Every matmul contracts dim 1 of the LHS with dim 0 of the RHS, so Mosaic
    feeds the MXU directly — no XLU transposes in the steady-state loop.
    """
    cdt = w1_ref.dtype                       # MXU operand dtype (bf16 or f32)
    x = x_ref[...].astype(cdt)               # (TB, V)

    # fc1 + relu:  (TB, V) @ (V, H) -> (TB, H)
    h = jnp.dot(x, w1t_ref[...], preferred_element_type=jnp.float32)
    h = jnp.maximum(h + b1_ref[...], 0.0).astype(cdt)

    # fc2:         (TB, H) @ (H, N) -> (TB, N)
    h = jnp.dot(h, w2t_ref[...], preferred_element_type=jnp.float32)
    h = (h + b2_ref[...]).astype(cdt)

    # fc3 (tied W3 = W2^T) + relu:  (TB, N) @ (N, H) -> (TB, H)
    h = jnp.dot(h, w2_ref[...], preferred_element_type=jnp.float32)
    h = jnp.maximum(h + b3_ref[...], 0.0).astype(cdt)

    # fc4 (tied W4 = W1^T):  (TB, H) @ (H, V) -> (TB, V)
    y = jnp.dot(h, w1_ref[...], preferred_element_type=jnp.float32)
    out_ref[...] = (y + b4_ref[...]).astype(out_ref.dtype)


def _ae_fused_kernel(x_ref, w1t_ref, m_ref, w1_ref,
                     b1_ref, c_ref, b4_ref, out_ref):
    """Fused fc2∘fc3 variant: h3 = relu(h1 @ (W2^T W2) + (b2 W2 + b3))."""
    cdt = w1_ref.dtype
    x = x_ref[...].astype(cdt)

    h = jnp.dot(x, w1t_ref[...], preferred_element_type=jnp.float32)
    h = jnp.maximum(h + b1_ref[...], 0.0).astype(cdt)

    h = jnp.dot(h, m_ref[...], preferred_element_type=jnp.float32)
    h = jnp.maximum(h + c_ref[...], 0.0).astype(cdt)

    y = jnp.dot(h, w1_ref[...], preferred_element_type=jnp.float32)
    out_ref[...] = (y + b4_ref[...]).astype(out_ref.dtype)


# --------------------------------------------------------------------------
# Hardware probes (cached, narrow fallbacks)
# --------------------------------------------------------------------------
@functools.lru_cache(maxsize=None)
def _vmem_capacity_bytes():
    try:
        cap = getattr(pltpu.get_tpu_info(), "vmem_capacity_bytes", None)
        if cap:
            return int(cap)
    except Exception:
        pass
    return 64 << 20          # conservative (v7x per-TC) fallback


@functools.lru_cache(maxsize=None)
def _num_tensorcores():
    try:
        info = pltpu.get_tpu_info()
        for attr in ("num_tensorcores", "tensorcores_per_chip", "num_cores"):
            v = getattr(info, attr, None)
            if v:
                return int(v)
    except Exception:
        pass
    return 2                 # conservative: assume megacore (v7x)


def _pick_block_b(batch, min_steps):
    """Largest MXU-friendly batch tile that keeps >= min_steps grid steps."""
    for cand in (256, 128, 64, 32, 16, 8):
        if batch % cand == 0 and batch // cand >= min_steps:
            return cand
    for cand in (256, 128, 64, 32, 16, 8):   # small batch: fewer steps is fine
        if batch % cand == 0:
            return cand
    return batch


# --------------------------------------------------------------------------
# pallas_call wrapper
# --------------------------------------------------------------------------
@functools.partial(
    jax.jit,
    static_argnames=("block_b", "param_dtype", "out_dtype", "fuse_mid"))
def _forward_impl(x, w1, b1, w2, b2, b3, b4, *, block_b, param_dtype,
                  out_dtype, fuse_mid):
    B, V = x.shape
    H = w1.shape[0]
    N = w2.shape[0]

    cdt = jnp.dtype(param_dtype)
    odt = jnp.dtype(out_dtype)

    # Both orientations are prepared ONCE in the wrapper (tiny vs. the batched
    # matmuls) so the kernel never runs an XLU transpose inside the grid loop.
    w1_c = w1.astype(cdt)                 # (H, V)   fc4
    w1t_c = w1.T.astype(cdt)              # (V, H)   fc1

    # Biases stay f32 (added to the f32 MXU accumulators).
    b1r = b1.reshape(1, H).astype(jnp.float32)
    b4r = b4.reshape(1, V).astype(jnp.float32)

    grid = (B // block_b,)
    resident = lambda shape: pl.BlockSpec(shape, lambda i: (0, 0))
    batched = lambda shape: pl.BlockSpec(shape, lambda i: (i, 0))

    wbytes = cdt.itemsize
    xbytes = jnp.dtype(x.dtype).itemsize
    obytes = odt.itemsize

    if fuse_mid:
        # M = W2^T W2, c = b2 W2 + b3 precomputed in f32, cast for the MXU.
        hp = jax.lax.Precision.HIGHEST
        w2f = w2.astype(jnp.float32)
        m_c = jnp.dot(w2f.T, w2f, precision=hp,
                      preferred_element_type=jnp.float32).astype(cdt)  # (H, H)
        c_r = (jnp.dot(b2.astype(jnp.float32), w2f, precision=hp)
               + b3.astype(jnp.float32)).reshape(1, H)

        kernel = _ae_fused_kernel
        operands = (x, w1t_c, m_c, w1_c, b1r, c_r, b4r)
        in_specs = [
            batched((block_b, V)),      # x
            resident((V, H)),           # W1^T
            resident((H, H)),           # M = W2^T W2
            resident((H, V)),           # W1
            resident((1, H)),           # b1
            resident((1, H)),           # c = b2 W2 + b3
            resident((1, V)),           # b4
        ]
        weight_elems = V * H + H * H + H * V
        bias_elems = 2 * H + V
        flops = 2 * B * (2 * V * H + H * H)
    else:
        w2_c = w2.astype(cdt)           # (N, H)   fc3
        w2t_c = w2.T.astype(cdt)        # (H, N)   fc2
        b2r = b2.reshape(1, N).astype(jnp.float32)
        b3r = b3.reshape(1, H).astype(jnp.float32)

        kernel = _ae_kernel
        operands = (x, w1t_c, w2t_c, w2_c, w1_c, b1r, b2r, b3r, b4r)
        in_specs = [
            batched((block_b, V)),      # x
            resident((V, H)),           # W1^T
            resident((H, N)),           # W2^T
            resident((N, H)),           # W2
            resident((H, V)),           # W1
            resident((1, H)),           # b1
            resident((1, N)),           # b2
            resident((1, H)),           # b3
            resident((1, V)),           # b4
        ]
        weight_elems = 2 * (V * H + N * H)
        bias_elems = 2 * H + N + V
        flops = 4 * B * (V * H + H * N)

    # VMEM budget: double-buffered x/out blocks, resident weights/biases
    # (default pipeline double-buffers those too, but their constant index map
    # means they are DMA'd only once), plus f32 intermediate headroom.
    vmem_needed = (
        2 * block_b * V * xbytes                 # x blocks
        + 2 * block_b * V * obytes               # out blocks
        + 2 * weight_elems * wbytes              # resident weights
        + 2 * bias_elems * 4                     # resident biases (f32)
        + 4 * block_b * max(V, H, N) * 4         # f32 intermediates / accum
    )
    vmem_limit = int(min(max(int(vmem_needed * 1.3) + (2 << 20), 32 << 20),
                         _vmem_capacity_bytes()))

    bytes_accessed = (B * V * (xbytes + obytes)
                      + weight_elems * wbytes + bias_elems * 4)

    return pl.pallas_call(
        kernel,
        out_shape=jax.ShapeDtypeStruct((B, V), odt),
        grid_spec=pltpu.PrefetchScalarGridSpec(
            num_scalar_prefetch=0,
            grid=grid,
            in_specs=in_specs,
            out_specs=batched((block_b, V)),
        ),
        compiler_params=pltpu.CompilerParams(
            dimension_semantics=("parallel",),
            vmem_limit_bytes=vmem_limit,
        ),
        cost_estimate=pl.CostEstimate(
            flops=flops, transcendentals=0, bytes_accessed=bytes_accessed),
    )(*operands)


def text_autoencoder_forward(x, w1, b1, w2, b2, b3, b4, *, block_b=None,
                             param_dtype=jnp.bfloat16, out_dtype=None,
                             fuse_mid=False):
    """x: (B, V). w1: (H, V), w2: (N, H) in PyTorch nn.Linear layout.

    param_dtype: MXU operand dtype (default bf16 — native on v6e/v7x;
      jnp.float32 gives the exact path).  Accumulation is always f32.
    out_dtype:   output dtype (default x.dtype).  bf16 halves the (B, V)
      HBM writeback, the biggest HBM stream after x.
    fuse_mid:    flag-gated fc2∘fc3 algebraic fusion (W2^T·W2 precomputed in
      the wrapper) — fills the 256-wide MXU; rounding differs slightly.
    """
    B = x.shape[0]
    if block_b is None:
        block_b = _pick_block_b(B, min_steps=2 * _num_tensorcores())
    if B % block_b != 0:
        raise ValueError(f"batch {B} must be divisible by block_b {block_b}")
    if out_dtype is None:
        out_dtype = x.dtype
    return _forward_impl(x, w1, b1, w2, b2, b3, b4, block_b=block_b,
                         param_dtype=param_dtype, out_dtype=out_dtype,
                         fuse_mid=fuse_mid)


# --------------------------------------------------------------------------
# Reference + self-test
# --------------------------------------------------------------------------
def _reference_forward(x, w1, b1, w2, b2, b3, b4):
    """Pure-JAX replica of the PyTorch forward() with tied weights."""
    mm = functools.partial(jnp.matmul, precision=jax.lax.Precision.HIGHEST)
    h1 = jax.nn.relu(mm(x, w1.T) + b1)
    h2 = mm(h1, w2.T) + b2
    h3 = jax.nn.relu(mm(h2, w2) + b3)     # fc3.weight = w2.T  =>  h2 @ w2
    return mm(h3, w1) + b4                # fc4.weight = w1.T  =>  h3 @ w1


if __name__ == "__main__":
    # TextAutoEncoder(vocab_size=512, n_node=128, hidden_size=256), batch=256.
    B, V, H, N = 256, 512, 256, 128

    key = jax.random.PRNGKey(0)
    k_x, k_w1, k_b1, k_w2, k_b2, k_b3, k_b4 = jax.random.split(key, 7)

    x = jax.random.normal(k_x, (B, V), dtype=jnp.float32)

    # Deterministic synthetic params mimicking nn.Linear fan-in scaling.
    w1 = jax.random.uniform(k_w1, (H, V), jnp.float32, -1.0, 1.0) / jnp.sqrt(V)
    b1 = jax.random.uniform(k_b1, (H,), jnp.float32, -1.0, 1.0) / jnp.sqrt(V)
    w2 = jax.random.uniform(k_w2, (N, H), jnp.float32, -1.0, 1.0) / jnp.sqrt(H)
    b2 = jax.random.uniform(k_b2, (N,), jnp.float32, -1.0, 1.0) / jnp.sqrt(H)
    b3 = jax.random.uniform(k_b3, (H,), jnp.float32, -1.0, 1.0) / jnp.sqrt(N)
    b4 = jax.random.uniform(k_b4, (V,), jnp.float32, -1.0, 1.0) / jnp.sqrt(H)

    ref = _reference_forward(x, w1, b1, w2, b2, b3, b4)

    # 1) Exact f32 path (block_b auto -> 64, grid=(4,), megacore-shardable).
    out_f32 = jax.block_until_ready(
        text_autoencoder_forward(x, w1, b1, w2, b2, b3, b4,
                                 param_dtype=jnp.float32))
    assert out_f32.shape == (B, V)
    assert jnp.allclose(out_f32, ref, atol=5e-3, rtol=5e-3), \
        "f32 mismatch vs reference"

    # 2) Default bf16 MXU path (f32 accumulation) vs bf16-rounded reference.
    out_bf16 = jax.block_until_ready(
        text_autoencoder_forward(x, w1, b1, w2, b2, b3, b4))
    ref_bf16 = _reference_forward(
        x.astype(jnp.bfloat16).astype(jnp.float32),
        w1.astype(jnp.bfloat16).astype(jnp.float32), b1,
        w2.astype(jnp.bfloat16).astype(jnp.float32), b2, b3, b4)
    assert jnp.allclose(out_bf16, ref_bf16, atol=5e-2, rtol=5e-2), \
        "bf16 mismatch vs bf16-rounded reference"

    # 3) Flag-gated fc2∘fc3 fusion (f32 operands; associativity changes
    #    rounding slightly, so compare with a modest tolerance).
    out_fused = jax.block_until_ready(
        text_autoencoder_forward(x, w1, b1, w2, b2, b3, b4,
                                 param_dtype=jnp.float32, fuse_mid=True))
    assert jnp.allclose(out_fused, ref, atol=1e-2, rtol=1e-2), \
        "fused-path mismatch vs reference"

    print("KERNEL_OK")
</pallas_src>

<mosaic_0001>
module attributes {stable_mosaic.version = 11 : i64} {
  func.func @_ae_kernel(%arg0: i32, %arg1: memref<64x512xf32, #tpu.memory_space<vmem>>, %arg2: memref<512x256xf32, #tpu.memory_space<vmem>>, %arg3: memref<256x128xf32, #tpu.memory_space<vmem>>, %arg4: memref<128x256xf32, #tpu.memory_space<vmem>>, %arg5: memref<256x512xf32, #tpu.memory_space<vmem>>, %arg6: memref<1x256xf32, #tpu.memory_space<vmem>>, %arg7: memref<1x128xf32, #tpu.memory_space<vmem>>, %arg8: memref<1x256xf32, #tpu.memory_space<vmem>>, %arg9: memref<1x512xf32, #tpu.memory_space<vmem>>, %arg10: memref<64x512xf32, #tpu.memory_space<vmem>>) attributes {dimension_semantics = [#tpu.dimension_semantics<parallel>], iteration_bounds = array<i64: 4>, scalar_prefetch = 0 : i64, scratch_operands = 0 : i64, tpu.core_type = #tpu.core_type<tc>, window_params = [{transform_indices = @transform_0, window_bounds = array<i64: 64, 512>}, {pipeline_mode = #tpu.pipeline_mode<synchronous>, transform_indices = @transform_1, window_bounds = array<i64: 512, 256>}, {pipeline_mode = #tpu.pipeline_mode<synchronous>, transform_indices = @transform_2, window_bounds = array<i64: 256, 128>}, {pipeline_mode = #tpu.pipeline_mode<synchronous>, transform_indices = @transform_3, window_bounds = array<i64: 128, 256>}, {pipeline_mode = #tpu.pipeline_mode<synchronous>, transform_indices = @transform_4, window_bounds = array<i64: 256, 512>}, {pipeline_mode = #tpu.pipeline_mode<synchronous>, transform_indices = @transform_5, window_bounds = array<i64: 1, 256>}, {pipeline_mode = #tpu.pipeline_mode<synchronous>, transform_indices = @transform_6, window_bounds = array<i64: 1, 128>}, {pipeline_mode = #tpu.pipeline_mode<synchronous>, transform_indices = @transform_7, window_bounds = array<i64: 1, 256>}, {pipeline_mode = #tpu.pipeline_mode<synchronous>, transform_indices = @transform_8, window_bounds = array<i64: 1, 512>}, {transform_indices = @transform_9, window_bounds = array<i64: 64, 512>}]} {
    %c0 = arith.constant 0 : index
    %c0_0 = arith.constant 0 : index
    %0 = vector.load %arg1[%c0, %c0_0] : memref<64x512xf32, #tpu.memory_space<vmem>>, vector<64x512xf32>
    %c0_1 = arith.constant 0 : index
    %c0_2 = arith.constant 0 : index
    %1 = vector.load %arg2[%c0_1, %c0_2] : memref<512x256xf32, #tpu.memory_space<vmem>>, vector<512x256xf32>
    %cst = arith.constant dense<0.000000e+00> : vector<64x256xf32>
    %2 = tpu.matmul %0, %1, %cst {dimension_numbers = #tpu.dot_dimension_numbers<[1], [0], [0], [1], [0, 0, 1, 1], [], []>} : vector<64x512xf32>, vector<512x256xf32>, vector<64x256xf32> -> vector<64x256xf32>
    %c0_3 = arith.constant 0 : index
    %c0_4 = arith.constant 0 : index
    %3 = vector.load %arg6[%c0_3, %c0_4] : memref<1x256xf32, #tpu.memory_space<vmem>>, vector<1x256xf32>
    %4 = vector.broadcast %3 : vector<1x256xf32> to vector<64x256xf32>
    %5 = arith.addf %2, %4 : vector<64x256xf32>
    %cst_5 = arith.constant 0.000000e+00 : f32
    %6 = vector.broadcast %cst_5 : f32 to vector<64x256xf32>
    %7 = arith.maximumf %5, %6 : vector<64x256xf32>
    %c0_6 = arith.constant 0 : index
    %c0_7 = arith.constant 0 : index
    %8 = vector.load %arg3[%c0_6, %c0_7] : memref<256x128xf32, #tpu.memory_space<vmem>>, vector<256x128xf32>
    %cst_8 = arith.constant dense<0.000000e+00> : vector<64x128xf32>
    %9 = tpu.matmul %7, %8, %cst_8 {dimension_numbers = #tpu.dot_dimension_numbers<[1], [0], [0], [1], [0, 0, 1, 1], [], []>} : vector<64x256xf32>, vector<256x128xf32>, vector<64x128xf32> -> vector<64x128xf32>
    %c0_9 = arith.constant 0 : index
    %c0_10 = arith.constant 0 : index
    %10 = vector.load %arg7[%c0_9, %c0_10] : memref<1x128xf32, #tpu.memory_space<vmem>>, vector<1x128xf32>
    %11 = vector.broadcast %10 : vector<1x128xf32> to vector<64x128xf32>
    %12 = arith.addf %9, %11 : vector<64x128xf32>
    %c0_11 = arith.constant 0 : index
    %c0_12 = arith.constant 0 : index
    %13 = vector.load %arg4[%c0_11, %c0_12] : memref<128x256xf32, #tpu.memory_space<vmem>>, vector<128x256xf32>
    %cst_13 = arith.constant dense<0.000000e+00> : vector<64x256xf32>
    %14 = tpu.matmul %12, %13, %cst_13 {dimension_numbers = #tpu.dot_dimension_numbers<[1], [0], [0], [1], [0, 0, 1, 1], [], []>} : vector<64x128xf32>, vector<128x256xf32>, vector<64x256xf32> -> vector<64x256xf32>
    %c0_14 = arith.constant 0 : index
    %c0_15 = arith.constant 0 : index
    %15 = vector.load %arg8[%c0_14, %c0_15] : memref<1x256xf32, #tpu.memory_space<vmem>>, vector<1x256xf32>
    %16 = vector.broadcast %15 : vector<1x256xf32> to vector<64x256xf32>
    %17 = arith.addf %14, %16 : vector<64x256xf32>
    %cst_16 = arith.constant 0.000000e+00 : f32
    %18 = vector.broadcast %cst_16 : f32 to vector<64x256xf32>
    %19 = arith.maximumf %17, %18 : vector<64x256xf32>
    %c0_17 = arith.constant 0 : index
    %c0_18 = arith.constant 0 : index
    %20 = vector.load %arg5[%c0_17, %c0_18] : memref<256x512xf32, #tpu.memory_space<vmem>>, vector<256x512xf32>
    %cst_19 = arith.constant dense<0.000000e+00> : vector<64x512xf32>
    %21 = tpu.matmul %19, %20, %cst_19 {dimension_numbers = #tpu.dot_dimension_numbers<[1], [0], [0], [1], [0, 0, 1, 1], [], []>} : vector<64x256xf32>, vector<256x512xf32>, vector<64x512xf32> -> vector<64x512xf32>
    %c0_20 = arith.constant 0 : index
    %c0_21 = arith.constant 0 : index
    %22 = vector.load %arg9[%c0_20, %c0_21] : memref<1x512xf32, #tpu.memory_space<vmem>>, vector<1x512xf32>
    %23 = vector.broadcast %22 : vector<1x512xf32> to vector<64x512xf32>
    %24 = arith.addf %21, %23 : vector<64x512xf32>
    %c0_22 = arith.constant 0 : index
    %c0_23 = arith.constant 0 : index
    %25 = vector.load %arg10[%c0_22, %c0_23] : memref<64x512xf32, #tpu.memory_space<vmem>>, vector<64x512xf32>
    tpu.vector_store %arg10[%c0_22, %c0_23], %24 {strides = array<i32>} : memref<64x512xf32, #tpu.memory_space<vmem>>, vector<64x512xf32>,
    return
  }
  func.func @transform_0(%arg0: i32) -> (i32, i32) {
    %c0_i32 = arith.constant 0 : i32
    %c0_i32_0 = arith.constant 0 : i32
    return %arg0, %c0_i32 : i32, i32
  }
  func.func @transform_1(%arg0: i32) -> (i32, i32) {
    %c0_i32 = arith.constant 0 : i32
    %c0_i32_0 = arith.constant 0 : i32
    %c0_i32_1 = arith.constant 0 : i32
    return %c0_i32, %c0_i32_0 : i32, i32
  }
  func.func @transform_2(%arg0: i32) -> (i32, i32) {
    %c0_i32 = arith.constant 0 : i32
    %c0_i32_0 = arith.constant 0 : i32
    %c0_i32_1 = arith.constant 0 : i32
    return %c0_i32, %c0_i32_0 : i32, i32
  }
  func.func @transform_3(%arg0: i32) -> (i32, i32) {
    %c0_i32 = arith.constant 0 : i32
    %c0_i32_0 = arith.constant 0 : i32
    %c0_i32_1 = arith.constant 0 : i32
    return %c0_i32, %c0_i32_0 : i32, i32
  }
  func.func @transform_4(%arg0: i32) -> (i32, i32) {
    %c0_i32 = arith.constant 0 : i32
    %c0_i32_0 = arith.constant 0 : i32
    %c0_i32_1 = arith.constant 0 : i32
    return %c0_i32, %c0_i32_0 : i32, i32
  }
  func.func @transform_5(%arg0: i32) -> (i32, i32) {
    %c0_i32 = arith.constant 0 : i32
    %c0_i32_0 = arith.constant 0 : i32
    %c0_i32_1 = arith.constant 0 : i32
    return %c0_i32, %c0_i32_0 : i32, i32
  }
  func.func @transform_6(%arg0: i32) -> (i32, i32) {
    %c0_i32 = arith.constant 0 : i32
    %c0_i32_0 = arith.constant 0 : i32
    %c0_i32_1 = arith.constant 0 : i32
    return %c0_i32, %c0_i32_0 : i32, i32
  }
  func.func @transform_7(%arg0: i32) -> (i32, i32) {
    %c0_i32 = arith.constant 0 : i32
    %c0_i32_0 = arith.constant 0 : i32
    %c0_i32_1 = arith.constant 0 : i32
    return %c0_i32, %c0_i32_0 : i32, i32
  }
  func.func @transform_8(%arg0: i32) -> (i32, i32) {
    %c0_i32 = arith.constant 0 : i32
    %c0_i32_0 = arith.constant 0 : i32
    %c0_i32_1 = arith.constant 0 : i32
    return %c0_i32, %c0_i32_0 : i32, i32
  }
  func.func @transform_9(%arg0: i32) -> (i32, i32) {
    %c0_i32 = arith.constant 0 : i32
    %c0_i32_0 = arith.constant 0 : i32
    return %arg0, %c0_i32 : i32, i32
  }
}

</mosaic_0001>

<bundles_post_ra>
// kernel: _forward_impl.1
= control target key start
LH: loop header
LB: loop body
LE: loop exit
PB: predicated region body
PF: predicated region fallthrough
CT: control target
= control target key end

     0   :  { %14 = vsyncpa [#allocation3], 0  ;;  %s3271_s0 = inlined_call_operand.vmem [shape: f32[256,512], index: 0, kind: input, shape index: {}]   ;;  %s3272_s1 = inlined_call_operand.vmem [shape: f32[512,256], index: 1, kind: input, shape index: {}]   ;;  %s3273_s2 = inlined_call_operand.vmem [shape: f32[256,128], index: 2, kind: input, shape index: {}]   ;;  %s3274_s3 = inlined_call_operand.vmem [shape: f32[128,256], index: 3, kind: input, shape index: {}]   ;;  %s3275_s4 = inlined_call_operand.vmem [shape: f32[256,512], index: 4, kind: input, shape index: {}]   ;;  %s3276_s5 = inlined_call_operand.vmem [shape: f32[1,256], index: 5, kind: input, shape index: {}]   ;;  %s3277_s6 = inlined_call_operand.vmem [shape: f32[1,128], index: 6, kind: input, shape index: {}]   ;;  %s3278_s7 = inlined_call_operand.vmem [shape: f32[1,256], index: 7, kind: input, shape index: {}]   ;;  %s3279_s8 = inlined_call_operand.vmem [shape: f32[1,512], index: 8, kind: input, shape index: {}]   ;;  %s3280_s9 = inlined_call_operand.hbm [shape: f32[256,512], index: 9, kind: output, shape index: {}]  }
   0x1   :  { %16 = vsyncpa [#allocation3 + $0x1], 0  ;;  %s1853_s30 = smov 0   ;;  %s1855_s10 = smov 0  }
   0x2   :  { %s1857_s11 = smov 0   ;;  %s1859_s12 = smov 0  }
   0x3 LB: > { %s1874_s13 = sadd.s32 4294967295, %s1799_s12   ;;  %s1678_s14 = sadd.s32 4294967294, %s1799_s12   ;;  %s1799_s12 = sphi %s1859_s12, %s3287_s12   ;;  %s1795_s11 = sphi %s1857_s11, %s3286_s11   ;;  %s1791_s10 = sphi %s1855_s10, %s3285_s10   ;;  %s1787_s30 = sphi %s1853_s30, %s3284_s30  }
   0x4   : > { %s1878_s15 = sadd.s32 1, %s1799_s12   ;;  %s223_s16 = sadd.s32 1, %s1795_s11 }
   0x5   : > { %s220_s17 = ssub.s32 %s1799_s12, %s1878_s15  ;;  %p233_p0 = scmp.ne.s32.totalorder %s1795_s11, %s1791_s10 }
   0x6   : > { %p221_p1 = scmp.eq.s32.totalorder %s220_s17, 0  ;;  %p234_p2 = scmp.eq.s32.totalorder %s1874_s13, 3 }
   0x7   : > { %p239_p3 = scmp.ne.s32.totalorder %s1791_s10, %s1787_s30  ;;  %p240_p4 = scmp.eq.s32.totalorder %s1678_s14, 3 }
   0x8   : > { %s1889_s18 = scalar_select %p221_p1, %s1795_s11, %s223_s16  }
   0x9   : > { %p1891_p5 = por %p234_p2, %p233_p0  ;;  %p1895_p6 = por %p240_p4, %p239_p3 }
   0xa   : > { %p1681_p7 = scmp.ge.s32.totalorder %s1799_s12, 1  ;;  %p292_p8 = scmp.lt.s32.totalorder %s1799_s12, 5 }
   0xc   : > { %p293_p9 = pnand %p1681_p7, %p292_p8 }
   0xd   : > { %s1683_s21 = sshll.u32 (!%p293_p9), %s1874_s13, 3  ;;  %s1694_s24 = sshll.u32 (!%p293_p9), %s1874_s13, 8 }
   0xe   : > { %296 = sbr.rel (%p293_p9) target bundleno = 779 (0x30b), region = 56  ;;  %p2012_p10 = scmp.lt.s32.totalorder (!%p293_p9), %s1683_s21, 31 }
   0xf   : > { %s1612_s26 = scalar_lea.hbm (!%p293_p9), %s3280_s9, %s1694_s24  ;;  %s1757_s24 = scalar_lea.hbm (!%p293_p9), %s3280_s9, 1024 }
  0x10   : > { %s1615_s29 = sshll.u32 (!%p293_p9), %s1612_s26, 4  ;;  %s1616_s29 = int_to_ptr.hbm [resolvable:$true] %s1615_s29 }
  0x11   : > { %s1751_s14 = sshra.s32 (!%p293_p9), %s1616_s29, 4  ;;  %s1752_s14 = int_to_ptr.hbm [resolvable:$true] %s1751_s14 }
  0x12   : > { %s1753_s16 = scalar_lea.hbm (!%p293_p9), %s1752_s14, 256  ;;  %p1758_p0 = scmp.lt.s32.totalorder (!%p293_p9), %s1752_s14, %s3280_s9 }
  0x13   : > { %v463_v0 = vld [vmem:[%s3272_s1 + $0x2f0] sm:$0xff]  ;;  %v461_v2 = vld [vmem:[%s3272_s1 + $0x2e0] sm:$0xff]  ;;  %s3289_s21 = smov (!%p2012_p10, %s1683_s21), 31  ;;  %p1754_p11 = scmp.ne.s32.totalorder %s1752_s14, %s1753_s16 }
  0x14   : > { %v399_v1 = vld [vmem:[%s3272_s1 + $0xf0] sm:$0xff]  ;;  %585 = vmatpush.msra.mxu2 %v463_v0  ;;  %v397_v4 = vld [vmem:[%s3272_s1 + $0xe0] sm:$0xff]  ;;  %s1692_s25 = sshll.u32 %s3289_s21, 5  ;;  %v464_v0 = vld [vmem:[%s3272_s1 + $0x2f8] sm:$0xff]  ;;  %s326_s21 = sand.u32 1, %s1791_s10  }
  0x15   : > { %503 = vmatpush.msra.mxu0 %v399_v1  ;;  %v495_v3 = vld [vmem:[%s3272_s1 + $0x3f0] sm:$0xff]  ;;  %v493_v7 = vld [vmem:[%s3272_s1 + $0x3e0] sm:$0xff]  ;;  %s2092_s28 = scalar_lea.vmem %s3271_s0, %s1692_s25  ;;  %s1682_s22 = sshll.u32 %s326_s21, 8 }
  0x16   : > { %v431_v5 = vld [vmem:[%s3272_s1 + $0x1f0] sm:$0xff]  ;;  %626 = vmatpush.msra.mxu3 %v495_v3  ;;  %586 = vmatpush.msra.mxu2 %v461_v2  ;;  %v429_v9 = vld [vmem:[%s3272_s1 + $0x1e0] sm:$0xff]  ;;  %v2119_v2 = vld [vmem:[%s2092_s28 + $0x18] sm:$0xff]  ;;  %s3166_s25 = scalar_lea.vmem [#allocation2], %s1682_s22  ;;  %s1600_s13 = scalar_lea.sflag [#allocation3], %s326_s21 }
  0x17   : > { %544 = vmatpush.msra.mxu1 %v431_v5  ;;  %v459_v6 = vld [vmem:[%s3272_s1 + $0x2d0] sm:$0xff]  ;;  %504 = vmatpush.msra.mxu0 %v397_v4  ;;  %v457_v11 = vld [vmem:[%s3272_s1 + $0x2c0] sm:$0xff]  ;;  %v400_v3 = vld [vmem:[%s3272_s1 + $0xf8] sm:$0xff]  ;;  %s1613_s27 = sshll.u32 %s3166_s25, 4  ;;  %p1755_p12 = pnand %p1754_p11, %p1891_p5  ;;  %s1614_s27 = int_to_ptr.vmem [resolvable:$true] %s1613_s27 }
  0x18   : > { %v395_v8 = vld [vmem:[%s3272_s1 + $0xd0] sm:$0xff]  ;;  %627 = vmatpush.msra.mxu3 %v493_v7  ;;  %v393_v12 = vld [vmem:[%s3272_s1 + $0xc0] sm:$0xff]  ;;  %587 = vmatpush.msra.mxu2 %v459_v6  ;;  %v496_v4 = vld [vmem:[%s3272_s1 + $0x3f8] sm:$0xff]  ;;  %p1759_p1 = scmp.lt.s32.totalorder %s1757_s24, %s1753_s16 }
  0x19   : > { %v491_v10 = vld [vmem:[%s3272_s1 + $0x3d0] sm:$0xff]  ;;  %545 = vmatpush.msra.mxu1 %v429_v9  ;;  %505 = vmatpush.msra.mxu0 %v395_v8  ;;  %v489_v14 = vld [vmem:[%s3272_s1 + $0x3c0] sm:$0xff]  ;;  %v2133_v6 = vld [vmem:[%s2092_s28 + $0x8] sm:$0xff]  ;;  %p1756_p13 = pneg %p1755_p12 }
  0x1a   : > { %v427_v13 = vld [vmem:[%s3272_s1 + $0x1d0] sm:$0xff]  ;;  %v425_v15 = vld [vmem:[%s3272_s1 + $0x1c0] sm:$0xff]  ;;  %628 = vmatpush.msra.mxu3 %v491_v10  ;;  %588 = vmatpush.msra.mxu2 %v457_v11  ;;  %v462_v7 = vld [vmem:[%s3272_s1 + $0x2e8] sm:$0xff]  ;;  %p1760_p2 = por %p1759_p1, %p1758_p0 }
  0x1b   : > { %546 = vmatpush.msra.mxu1 %v427_v13  ;;  %v455_v16 = vld [vmem:[%s3272_s1 + $0x2b0] sm:$0xff]  ;;  %506 = vmatpush.msra.mxu0 %v393_v12  ;;  %v453_v20 = vld [vmem:[%s3272_s1 + $0x2a0] sm:$0xff]  ;;  %v432_v8 = vld [vmem:[%s3272_s1 + $0x1f8] sm:$0xff] }
  0x1c   : > { %v391_v17 = vld [vmem:[%s3272_s1 + $0xb0] sm:$0xff]  ;;  %629 = vmatpush.msra.mxu3 %v489_v14  ;;  %v389_v21 = vld [vmem:[%s3272_s1 + $0xa0] sm:$0xff]  ;;  %589 = vmatpush.msra.mxu2 %v455_v16  ;;  %v398_v9 = vld [vmem:[%s3272_s1 + $0xe8] sm:$0xff]  ;;  %p1761_p3 = pnand %p1760_p2, %p1756_p13 }
  0x1d   : > { %v487_v18 = vld [vmem:[%s3272_s1 + $0x3b0] sm:$0xff]  ;;  %547 = vmatpush.msra.mxu1 %v425_v15  ;;  %507 = vmatpush.msra.mxu0 %v391_v17  ;;  %v485_v22 = vld [vmem:[%s3272_s1 + $0x3a0] sm:$0xff]  ;;  %v494_v10 = vld [vmem:[%s3272_s1 + $0x3e8] sm:$0xff] }
  0x1e   : > { %v423_v19 = vld [vmem:[%s3272_s1 + $0x1b0] sm:$0xff]  ;;  %v421_v23 = vld [vmem:[%s3272_s1 + $0x1a0] sm:$0xff]  ;;  %630 = vmatpush.msra.mxu3 %v487_v18  ;;  %590 = vmatpush.msra.mxu2 %v453_v20  ;;  %v460_v11 = vld [vmem:[%s3272_s1 + $0x2d8] sm:$0xff] }
  0x1f   : > { %548 = vmatpush.msra.mxu1 %v423_v19  ;;  %v451_v24 = vld [vmem:[%s3272_s1 + $0x290] sm:$0xff]  ;;  %508 = vmatpush.msra.mxu0 %v389_v21  ;;  %v449_v28 = vld [vmem:[%s3272_s1 + $0x280] sm:$0xff]  ;;  %v430_v12 = vld [vmem:[%s3272_s1 + $0x1e8] sm:$0xff] }
  0x20   : > { %v387_v25 = vld [vmem:[%s3272_s1 + $0x90] sm:$0xff]  ;;  %631 = vmatpush.msra.mxu3 %v485_v22  ;;  %v385_v29 = vld [vmem:[%s3272_s1 + $0x80] sm:$0xff]  ;;  %591 = vmatpush.msra.mxu2 %v451_v24  ;;  %v396_v13 = vld [vmem:[%s3272_s1 + $0xd8] sm:$0xff] }
  0x21   : > { %v483_v26 = vld [vmem:[%s3272_s1 + $0x390] sm:$0xff]  ;;  %549 = vmatpush.msra.mxu1 %v421_v23  ;;  %509 = vmatpush.msra.mxu0 %v387_v25  ;;  %v481_v30 = vld [vmem:[%s3272_s1 + $0x380] sm:$0xff]  ;;  %v492_v15 = vld [vmem:[%s3272_s1 + $0x3d8] sm:$0xff] }
  0x22   : > { %v419_v27 = vld [vmem:[%s3272_s1 + $0x190] sm:$0xff]  ;;  %v417_v31 = vld [vmem:[%s3272_s1 + $0x180] sm:$0xff]  ;;  %632 = vmatpush.msra.mxu3 %v483_v26  ;;  %592 = vmatpush.msra.mxu2 %v449_v28  ;;  %v428_v17 = vld [vmem:[%s3272_s1 + $0x1d8] sm:$0xff] }
  0x23   : > { %550 = vmatpush.msra.mxu1 %v419_v27  ;;  %v447_v32 = vld [vmem:[%s3272_s1 + $0x270] sm:$0xff]  ;;  %510 = vmatpush.msra.mxu0 %v385_v29  ;;  %v445_v36 = vld [vmem:[%s3272_s1 + $0x260] sm:$0xff]  ;;  %v2171_v18 = vld [vmem:[%s2092_s28 + $0x38] sm:$0xff] }
  0x24   : > { %v383_v33 = vld [vmem:[%s3272_s1 + $0x70] sm:$0xff]  ;;  %633 = vmatpush.msra.mxu3 %v481_v30  ;;  %v381_v37 = vld [vmem:[%s3272_s1 + $0x60] sm:$0xff]  ;;  %593 = vmatpush.msra.mxu2 %v447_v32  ;;  %v458_v19 = vld [vmem:[%s3272_s1 + $0x2c8] sm:$0xff] }
  0x25   : > { %v479_v34 = vld [vmem:[%s3272_s1 + $0x370] sm:$0xff]  ;;  %551 = vmatpush.msra.mxu1 %v417_v31  ;;  %511 = vmatpush.msra.mxu0 %v383_v33  ;;  %v477_v38 = vld [vmem:[%s3272_s1 + $0x360] sm:$0xff]  ;;  %v394_v20 = vld [vmem:[%s3272_s1 + $0xc8] sm:$0xff] }
  0x26   : > { %v415_v35 = vld [vmem:[%s3272_s1 + $0x170] sm:$0xff]  ;;  %v413_v39 = vld [vmem:[%s3272_s1 + $0x160] sm:$0xff]  ;;  %634 = vmatpush.msra.mxu3 %v479_v34  ;;  %594 = vmatpush.msra.mxu2 %v445_v36  ;;  %v490_v21 = vld [vmem:[%s3272_s1 + $0x3c8] sm:$0xff] }
  0x27   : > { %552 = vmatpush.msra.mxu1 %v415_v35  ;;  %v443_v40 = vld [vmem:[%s3272_s1 + $0x250] sm:$0xff]  ;;  %512 = vmatpush.msra.mxu0 %v381_v37  ;;  %v441_v44 = vld [vmem:[%s3272_s1 + $0x240] sm:$0xff]  ;;  %v2185_v22 = vld [vmem:[%s2092_s28 + $0x28] sm:$0xff] }
  0x28   : > { %v379_v41 = vld [vmem:[%s3272_s1 + $0x50] sm:$0xff]  ;;  %635 = vmatpush.msra.mxu3 %v477_v38  ;;  %v377_v45 = vld [vmem:[%s3272_s1 + $0x40] sm:$0xff]  ;;  %595 = vmatpush.msra.mxu2 %v443_v40  ;;  %v456_v23 = vld [vmem:[%s3272_s1 + $0x2b8] sm:$0xff] }
  0x29   : > { %v475_v42 = vld [vmem:[%s3272_s1 + $0x350] sm:$0xff]  ;;  %553 = vmatpush.msra.mxu1 %v413_v39  ;;  %513 = vmatpush.msra.mxu0 %v379_v41  ;;  %v473_v46 = vld [vmem:[%s3272_s1 + $0x340] sm:$0xff]  ;;  %v426_v24 = vld [vmem:[%s3272_s1 + $0x1c8] sm:$0xff] }
  0x2a   : > { %v411_v43 = vld [vmem:[%s3272_s1 + $0x150] sm:$0xff]  ;;  %v409_v47 = vld [vmem:[%s3272_s1 + $0x140] sm:$0xff]  ;;  %636 = vmatpush.msra.mxu3 %v475_v42  ;;  %596 = vmatpush.msra.mxu2 %v441_v44  ;;  %v392_v25 = vld [vmem:[%s3272_s1 + $0xb8] sm:$0xff] }
  0x2b   : > { %554 = vmatpush.msra.mxu1 %v411_v43  ;;  %v439_v48 = vld [vmem:[%s3272_s1 + $0x230] sm:$0xff]  ;;  %514 = vmatpush.msra.mxu0 %v377_v45  ;;  %v437_v52 = vld [vmem:[%s3272_s1 + $0x220] sm:$0xff]  ;;  %v488_v26 = vld [vmem:[%s3272_s1 + $0x3b8] sm:$0xff] }
  0x2c   : > { %v375_v49 = vld [vmem:[%s3272_s1 + $0x30] sm:$0xff]  ;;  %637 = vmatpush.msra.mxu3 %v473_v46  ;;  %v373_v53 = vld [vmem:[%s3272_s1 + $0x20] sm:$0xff]  ;;  %597 = vmatpush.msra.mxu2 %v439_v48  ;;  %v454_v27 = vld [vmem:[%s3272_s1 + $0x2a8] sm:$0xff] }
  0x2d   : > { %v471_v50 = vld [vmem:[%s3272_s1 + $0x330] sm:$0xff]  ;;  %555 = vmatpush.msra.mxu1 %v409_v47  ;;  %515 = vmatpush.msra.mxu0 %v375_v49  ;;  %v469_v54 = vld [vmem:[%s3272_s1 + $0x320] sm:$0xff]  ;;  %v424_v28 = vld [vmem:[%s3272_s1 + $0x1b8] sm:$0xff] }
  0x2e   : > { %v407_v51 = vld [vmem:[%s3272_s1 + $0x130] sm:$0xff]  ;;  %v405_v55 = vld [vmem:[%s3272_s1 + $0x120] sm:$0xff]  ;;  %638 = vmatpush.msra.mxu3 %v471_v50  ;;  %598 = vmatpush.msra.mxu2 %v437_v52  ;;  %v390_v29 = vld [vmem:[%s3272_s1 + $0xa8] sm:$0xff] }
  0x2f   : > { %556 = vmatpush.msra.mxu1 %v407_v51  ;;  %v435_v56 = vld [vmem:[%s3272_s1 + $0x210] sm:$0xff]  ;;  %516 = vmatpush.msra.mxu0 %v373_v53  ;;  %v433_v60 = vld [vmem:[%s3272_s1 + $0x200] sm:$0xff]  ;;  %v486_v31 = vld [vmem:[%s3272_s1 + $0x3a8] sm:$0xff] }
  0x30   : > { %v371_v57 = vld [vmem:[%s3272_s1 + $0x10] sm:$0xff]  ;;  %639 = vmatpush.msra.mxu3 %v469_v54  ;;  %v369_v61 = vld [vmem:[%s3272_s1] sm:$0xff]  ;;  %599 = vmatpush.msra.mxu2 %v435_v56  ;;  %v422_v33 = vld [vmem:[%s3272_s1 + $0x1a8] sm:$0xff] }
  0x31   : > { %v467_v58 = vld [vmem:[%s3272_s1 + $0x310] sm:$0xff]  ;;  %557 = vmatpush.msra.mxu1 %v405_v55  ;;  %517 = vmatpush.msra.mxu0 %v371_v57  ;;  %v465_v63 = vld [vmem:[%s3272_s1 + $0x300] sm:$0xff]  ;;  %v2223_v34 = vld [vmem:[%s2092_s28 + $0x58] sm:$0xff] }
  0x32   : > { %v403_v59 = vld [vmem:[%s3272_s1 + $0x110] sm:$0xff]  ;;  %640 = vmatpush.msra.mxu3 %v467_v58  ;;  %v2116_v1 = vld [vmem:[%s2092_s28] sm:$0xff]  ;;  %600 = vmatpush.msra.mxu2 %v433_v60  ;;  %v452_v35 = vld [vmem:[%s3272_s1 + $0x298] sm:$0xff] }
  0x33   : > { %v2107_v62 = vld [vmem:[%s2092_s28 + $0x10] sm:$0xff]  ;;  %558 = vmatpush.msra.mxu1 %v403_v59  ;;  %518 = vmatpush.msra.mxu0 %v369_v61  ;;  %v401_v5 = vld [vmem:[%s3272_s1 + $0x100] sm:$0xff]  ;;  %v388_v36 = vld [vmem:[%s3272_s1 + $0x98] sm:$0xff] }
  0x34   : > { %601 = vmatmul.f32.vlgmr.msra.gmra.mxu2 %v2107_v62  ;;  %641 = vmatpush.msra.mxu3 %v465_v63  ;;  %v2159_v14 = vld [vmem:[%s2092_s28 + $0x30] sm:$0xff]  ;;  %v2165_v16 = vld [vmem:[%s2092_s28 + $0x20] sm:$0xff]  ;;  %v484_v37 = vld [vmem:[%s3272_s1 + $0x398] sm:$0xff] }
  0x35   : > { %749 = vmatpush.msrb.mxu2 %v464_v0  ;;  %519 = vmatmul.f32.vlgmr.msra.gmra.mxu0 %v2116_v1  ;;  %v2211_v30 = vld [vmem:[%s2092_s28 + $0x50] sm:$0xff]  ;;  %v2217_v32 = vld [vmem:[%s2092_s28 + $0x40] sm:$0xff]  ;;  %v2237_v38 = vld [vmem:[%s2092_s28 + $0x48] sm:$0xff] }
  0x36   : > { %642 = vmatmul.f32.vlgmr.msra.gmra.mxu3 %v2119_v2  ;;  %667 = vmatpush.msrb.mxu0 %v400_v3  ;;  %v450_v39 = vld [vmem:[%s3272_s1 + $0x288] sm:$0xff]  ;;  %v420_v40 = vld [vmem:[%s3272_s1 + $0x198] sm:$0xff]  ;;  %v2263_v46 = vld [vmem:[%s2092_s28 + $0x70] sm:$0xff] }
  0x37   : > { %790 = vmatpush.msrb.mxu3 %v496_v4  ;;  %559 = vmatpush.msra.mxu1 %v401_v5  ;;  %v386_v41 = vld [vmem:[%s3272_s1 + $0x88] sm:$0xff]  ;;  %v448_v43 = vld [vmem:[%s3272_s1 + $0x278] sm:$0xff]  ;;  %v2269_v48 = vld [vmem:[%s2092_s28 + $0x60] sm:$0xff] }
  0x38   : > { %560 = vmatmul.f32.vlgmr.msra.gmra.mxu1 %v2133_v6  ;;  %750 = vmatpush.msrb.mxu2 %v462_v7  ;;  %v482_v42 = vld [vmem:[%s3272_s1 + $0x388] sm:$0xff]  ;;  %v384_v45 = vld [vmem:[%s3272_s1 + $0x78] sm:$0xff]  ;;  %v2315_v63 = vld [vmem:[%s2092_s28 + $0x90] sm:$0xff] }
  0x39   : > { %708 = vmatpush.msrb.mxu1 %v432_v8  ;;  %668 = vmatpush.msrb.mxu0 %v398_v9  ;;  %v418_v44 = vld [vmem:[%s3272_s1 + $0x188] sm:$0xff]  ;;  %v480_v47 = vld [vmem:[%s3272_s1 + $0x378] sm:$0xff]  ;;  %v2321_v3 = vld [vmem:[%s2092_s28 + $0x80] sm:$0xff] }
  0x3a   : > { %791 = vmatpush.msrb.mxu3 %v494_v10  ;;  %751 = vmatpush.msrb.mxu2 %v460_v11  ;;  %v416_v49 = vld [vmem:[%s3272_s1 + $0x178] sm:$0xff]  ;;  %v446_v51 = vld [vmem:[%s3272_s1 + $0x268] sm:$0xff] }
  0x3b   : > { %709 = vmatpush.msrb.mxu1 %v430_v12  ;;  %669 = vmatpush.msrb.mxu0 %v396_v13  ;;  %v2275_v50 = vld [vmem:[%s2092_s28 + $0x78] sm:$0xff]  ;;  %v382_v52 = vld [vmem:[%s3272_s1 + $0x68] sm:$0xff] }
  0x3c   : > { %604 = vmatmul.f32.gmra.mxu2 %v2159_v14  ;;  %792 = vmatpush.msrb.mxu3 %v492_v15  ;;  %v478_v53 = vld [vmem:[%s3272_s1 + $0x368] sm:$0xff]  ;;  %v444_v55 = vld [vmem:[%s3272_s1 + $0x258] sm:$0xff] }
  0x3d   : > { %522 = vmatmul.f32.gmra.mxu0 %v2165_v16  ;;  %710 = vmatpush.msrb.mxu1 %v428_v17  ;;  %v2289_v54 = vld [vmem:[%s2092_s28 + $0x68] sm:$0xff]  ;;  %v380_v57 = vld [vmem:[%s3272_s1 + $0x58] sm:$0xff] }
  0x3e   : > { %645 = vmatmul.f32.gmra.mxu3 %v2171_v18  ;;  %752 = vmatpush.msrb.mxu2 %v458_v19  ;;  %v414_v56 = vld [vmem:[%s3272_s1 + $0x168] sm:$0xff]  ;;  %v476_v58 = vld [vmem:[%s3272_s1 + $0x358] sm:$0xff] }
  0x3f   : > { %670 = vmatpush.msrb.mxu0 %v394_v20  ;;  %793 = vmatpush.msrb.mxu3 %v490_v21  ;;  %v442_v59 = vld [vmem:[%s3272_s1 + $0x248] sm:$0xff]  ;;  %v412_v60 = vld [vmem:[%s3272_s1 + $0x158] sm:$0xff]  ;;  %v2367_v21 = vld [vmem:[%s2092_s28 + $0xb0] sm:$0xff] }
  0x40   : > { %563 = vmatmul.f32.gmra.mxu1 %v2185_v22  ;;  %753 = vmatpush.msrb.mxu2 %v456_v23  ;;  %v378_v61 = vld [vmem:[%s3272_s1 + $0x48] sm:$0xff]  ;;  %v2327_v5 = vld [vmem:[%s2092_s28 + $0x98] sm:$0xff] }
  0x41   : > { %711 = vmatpush.msrb.mxu1 %v426_v24  ;;  %671 = vmatpush.msrb.mxu0 %v392_v25  ;;  %v474_v0 = vld [vmem:[%s3272_s1 + $0x348] sm:$0xff]  ;;  %v440_v7 = vld [vmem:[%s3272_s1 + $0x238] sm:$0xff]  ;;  %v2373_v24 = vld [vmem:[%s2092_s28 + $0xa0] sm:$0xff] }
  0x42   : > { %794 = vmatpush.msrb.mxu3 %v488_v26  ;;  %754 = vmatpush.msrb.mxu2 %v454_v27  ;;  %v410_v4 = vld [vmem:[%s3272_s1 + $0x148] sm:$0xff]  ;;  %v376_v8 = vld [vmem:[%s3272_s1 + $0x38] sm:$0xff] }
  0x43   : > { %712 = vmatpush.msrb.mxu1 %v424_v28  ;;  %672 = vmatpush.msrb.mxu0 %v390_v29  ;;  %v472_v9 = vld [vmem:[%s3272_s1 + $0x338] sm:$0xff]  ;;  %v2341_v10 = vld [vmem:[%s2092_s28 + $0x88] sm:$0xff] }
  0x44   : > { %607 = vmatmul.f32.gmra.mxu2 %v2211_v30  ;;  %795 = vmatpush.msrb.mxu3 %v486_v31  ;;  %v438_v11 = vld [vmem:[%s3272_s1 + $0x228] sm:$0xff]  ;;  %v408_v12 = vld [vmem:[%s3272_s1 + $0x138] sm:$0xff] }
  0x45   : > { %525 = vmatmul.f32.gmra.mxu0 %v2217_v32  ;;  %713 = vmatpush.msrb.mxu1 %v422_v33  ;;  %v374_v13 = vld [vmem:[%s3272_s1 + $0x28] sm:$0xff]  ;;  %v436_v17 = vld [vmem:[%s3272_s1 + $0x218] sm:$0xff] }
  0x46   : > { %648 = vmatmul.f32.gmra.mxu3 %v2223_v34  ;;  %755 = vmatpush.msrb.mxu2 %v452_v35  ;;  %v470_v15 = vld [vmem:[%s3272_s1 + $0x328] sm:$0xff]  ;;  %v372_v20 = vld [vmem:[%s3272_s1 + $0x18] sm:$0xff]  ;;  %v2401_v35 = vld [vmem:[%s2092_s28 + $0xd0] sm:$0xff] }
  0x47   : > { %673 = vmatpush.msrb.mxu0 %v388_v36  ;;  %796 = vmatpush.msrb.mxu3 %v484_v37  ;;  %v406_v19 = vld [vmem:[%s3272_s1 + $0x128] sm:$0xff]  ;;  %v468_v23 = vld [vmem:[%s3272_s1 + $0x318] sm:$0xff]  ;;  %v2404_v36 = vld [vmem:[%s2092_s28 + $0xc0] sm:$0xff] }
  0x48   : > { %566 = vmatmul.f32.gmra.mxu1 %v2237_v38  ;;  %756 = vmatpush.msrb.mxu2 %v450_v39  ;;  %v404_v25 = vld [vmem:[%s3272_s1 + $0x118] sm:$0xff]  ;;  %v434_v27 = vld [vmem:[%s3272_s1 + $0x208] sm:$0xff] }
  0x49   : > { %714 = vmatpush.msrb.mxu1 %v420_v40  ;;  %674 = vmatpush.msrb.mxu0 %v386_v41  ;;  %v2379_v26 = vld [vmem:[%s2092_s28 + $0xb8] sm:$0xff]  ;;  %v370_v28 = vld [vmem:[%s3272_s1 + $0x8] sm:$0xff]  ;;  %v2417_v40 = vld [vmem:[%s2092_s28 + $0xf0] sm:$0xff] }
  0x4a   : > { %797 = vmatpush.msrb.mxu3 %v482_v42  ;;  %757 = vmatpush.msrb.mxu2 %v448_v43  ;;  %v466_v29 = vld [vmem:[%s3272_s1 + $0x308] sm:$0xff]  ;;  %v2407_v37 = vld [vmem:[%s2092_s28 + $0xd8] sm:$0xff]  ;;  %v2420_v41 = vld [vmem:[%s2092_s28 + $0xe0] sm:$0xff] }
  0x4b   : > { %715 = vmatpush.msrb.mxu1 %v418_v44  ;;  %675 = vmatpush.msrb.mxu0 %v384_v45  ;;  %v2393_v31 = vld [vmem:[%s2092_s28 + $0xa8] sm:$0xff]  ;;  %v2423_v42 = vld [vmem:[%s2092_s28 + $0xf8] sm:$0xff]  ;;  %v849_v45 = vld [vmem:[%s3273_s2 + $0x10] sm:$0xff] }
  0x4c   : > { %610 = vmatmul.f32.gmra.mxu2 %v2263_v46  ;;  %798 = vmatpush.msrb.mxu3 %v480_v47  ;;  %v402_v33 = vld [vmem:[%s3272_s1 + $0x108] sm:$0xff]  ;;  %v862_v44 = vld [vmem:[%s3273_s2 + $0x78] sm:$0xff]  ;;  %v847_v47 = vld [vmem:[%s3273_s2] sm:$0xff] }
  0x4d   : > { %528 = vmatmul.f32.gmra.mxu0 %v2269_v48  ;;  %716 = vmatpush.msrb.mxu1 %v416_v49  ;;  %v2412_v39 = vld [vmem:[%s2092_s28 + $0xc8] sm:$0xff]  ;;  %v877_v49 = vld [vmem:[%s3273_s2 + $0xf0] sm:$0xff] }
  0x4e   : > { %651 = vmatmul.f32.gmra.mxu3 %v2275_v50  ;;  %758 = vmatpush.msrb.mxu2 %v446_v51  ;;  %v2428_v43 = vld [vmem:[%s2092_s28 + $0xe8] sm:$0xff]  ;;  %v875_v51 = vld [vmem:[%s3273_s2 + $0xe0] sm:$0xff] }
  0x4f   : > { %676 = vmatpush.msrb.mxu0 %v382_v52  ;;  %799 = vmatpush.msrb.mxu3 %v478_v53  ;;  %v2524_v52 = vld [vmem:[%s3276_s5] sm:$0x3]  ;;  %v874_v53 = vld [vmem:[%s3273_s2 + $0xd8] sm:$0xff] }
  0x50   : > { %569 = vmatmul.f32.gmra.mxu1 %v2289_v54  ;;  %759 = vmatpush.msrb.mxu2 %v444_v55 }
  0x51   : > { %717 = vmatpush.msrb.mxu1 %v414_v56  ;;  %677 = vmatpush.msrb.mxu0 %v380_v57  ;;  %v873_v56 = vld [vmem:[%s3273_s2 + $0xd0] sm:$0xff] }
  0x52   : > { %800 = vmatpush.msrb.mxu3 %v476_v58  ;;  %760 = vmatpush.msrb.mxu2 %v442_v59 }
  0x53   : > { %718 = vmatpush.msrb.mxu1 %v412_v60  ;;  %678 = vmatpush.msrb.mxu0 %v378_v61  ;;  %v872_v60 = vld [vmem:[%s3273_s2 + $0xc8] sm:$0xff] }
  0x54   : > { %613 = vmatmul.f32.gmra.mxu2 %v2315_v63  ;;  %801 = vmatpush.msrb.mxu3 %v474_v0 }
  0x55   : > { %531 = vmatmul.f32.gmra.mxu0 %v2321_v3  ;;  %719 = vmatpush.msrb.mxu1 %v410_v4 }
  0x56   : > { %654 = vmatmul.f32.gmra.mxu3 %v2327_v5  ;;  %761 = vmatpush.msrb.mxu2 %v440_v7 }
  0x57   : > { %679 = vmatpush.msrb.mxu0 %v376_v8  ;;  %802 = vmatpush.msrb.mxu3 %v472_v9 }
  0x58   : > { %572 = vmatmul.f32.gmra.mxu1 %v2341_v10  ;;  %762 = vmatpush.msrb.mxu2 %v438_v11  ;;  %v870_v11 = vld [vmem:[%s3273_s2 + $0xb8] sm:$0xff] }
  0x59   : > { %720 = vmatpush.msrb.mxu1 %v408_v12  ;;  %680 = vmatpush.msrb.mxu0 %v374_v13 }
  0x5a   : > { %803 = vmatpush.msrb.mxu3 %v470_v15  ;;  %763 = vmatpush.msrb.mxu2 %v436_v17 }
  0x5b   : > { %721 = vmatpush.msrb.mxu1 %v406_v19  ;;  %681 = vmatpush.msrb.mxu0 %v372_v20  ;;  %v869_v20 = vld [vmem:[%s3273_s2 + $0xb0] sm:$0xff] }
  0x5c   : > { %616 = vmatmul.f32.gmra.mxu2 %v2367_v21  ;;  %804 = vmatpush.msrb.mxu3 %v468_v23 }
  0x5d   : > { %534 = vmatmul.f32.gmra.mxu0 %v2373_v24  ;;  %722 = vmatpush.msrb.mxu1 %v404_v25 }
  0x5e   : > { %657 = vmatmul.f32.gmra.mxu3 %v2379_v26  ;;  %764 = vmatpush.msrb.mxu2 %v434_v27 }
  0x5f   : > { %682 = vmatpush.msrb.mxu0 %v370_v28  ;;  %805 = vmatpush.msrb.mxu3 %v466_v29 }
  0x60   : > { %575 = vmatmul.f32.gmra.mxu1 %v2393_v31 }
  0x61   : > { %723 = vmatpush.msrb.mxu1 %v402_v33  ;;  %883 = vmatpush.msra.mxu0 %v862_v44 }
  0x64   : > { %619 = vmatmul.f32.gmra.mxu2 %v2401_v35 }
  0x65   : > { %537 = vmatmul.f32.gmra.mxu0 %v2404_v36 }
  0x66   : > { %660 = vmatmul.f32.gmra.mxu3 %v2407_v37 }
  0x68   : > { %578 = vmatmul.f32.gmra.mxu1 %v2412_v39 }
  0x6c   : > { %622 = vmatmul.f32.gmra.mxu2 %v2417_v40 }
  0x6d   : > { %540 = vmatmul.f32.gmra.mxu0 %v2420_v41 }
  0x6e   : > { %663 = vmatmul.f32.gmra.mxu3 %v2423_v42 }
  0x70   : > { %581 = vmatmul.f32.gmra.mxu1 %v2428_v43 }
  0x74   : > { %765 = vmatmul.f32.vlgmr.msrb.gmra.mxu2 %v2107_v62  ;;  %v861_v62 = vld [vmem:[%s3273_s2 + $0x70] sm:$0xff] }
  0x75   : > { %683 = vmatmul.f32.vlgmr.msrb.gmra.mxu0 %v2116_v1  ;;  %v860_v1 = vld [vmem:[%s3273_s2 + $0x68] sm:$0xff] }
  0x76   : > { %806 = vmatmul.f32.vlgmr.msrb.gmra.mxu3 %v2119_v2  ;;  %884 = vmatpush.msra.mxu0 %v861_v62  ;;  %v859_v2 = vld [vmem:[%s3273_s2 + $0x60] sm:$0xff] }
  0x78   : > { %724 = vmatmul.f32.vlgmr.msrb.gmra.mxu1 %v2133_v6  ;;  %885 = vmatpush.msra.mxu0 %v860_v1  ;;  %v858_v6 = vld [vmem:[%s3273_s2 + $0x58] sm:$0xff] }
  0x7a   : > { %886 = vmatpush.msra.mxu0 %v859_v2  ;;  %v865_v2 = vld [vmem:[%s3273_s2 + $0x90] sm:$0xff] }
  0x7c   : > { %768 = vmatmul.f32.gmra.mxu2 %v2159_v14  ;;  %887 = vmatpush.msra.mxu0 %v858_v6  ;;  %v857_v14 = vld [vmem:[%s3273_s2 + $0x50] sm:$0xff] }
  0x7d   : > { %686 = vmatmul.f32.gmra.mxu0 %v2165_v16  ;;  %v856_v16 = vld [vmem:[%s3273_s2 + $0x48] sm:$0xff] }
  0x7e   : > { %809 = vmatmul.f32.gmra.mxu3 %v2171_v18  ;;  %888 = vmatpush.msra.mxu0 %v857_v14  ;;  %v855_v18 = vld [vmem:[%s3273_s2 + $0x40] sm:$0xff] }
  0x80   : > { %727 = vmatmul.f32.gmra.mxu1 %v2185_v22  ;;  %889 = vmatpush.msra.mxu0 %v856_v16  ;;  %v854_v22 = vld [vmem:[%s3273_s2 + $0x38] sm:$0xff] }
  0x82   : > { %890 = vmatpush.msra.mxu0 %v855_v18 }
  0x84   : > { %771 = vmatmul.f32.gmra.mxu2 %v2211_v30  ;;  %891 = vmatpush.msra.mxu0 %v854_v22  ;;  %v853_v30 = vld [vmem:[%s3273_s2 + $0x30] sm:$0xff]  ;;  %v864_v22 = vld [vmem:[%s3273_s2 + $0x88] sm:$0xff] }
  0x85   : > { %689 = vmatmul.f32.gmra.mxu0 %v2217_v32  ;;  %v852_v32 = vld [vmem:[%s3273_s2 + $0x28] sm:$0xff] }
  0x86   : > { %812 = vmatmul.f32.gmra.mxu3 %v2223_v34  ;;  %892 = vmatpush.msra.mxu0 %v853_v30  ;;  %v851_v34 = vld [vmem:[%s3273_s2 + $0x20] sm:$0xff] }
  0x88   : > { %730 = vmatmul.f32.gmra.mxu1 %v2237_v38  ;;  %893 = vmatpush.msra.mxu0 %v852_v32  ;;  %v850_v38 = vld [vmem:[%s3273_s2 + $0x18] sm:$0xff] }
  0x8a   : > { %894 = vmatpush.msra.mxu0 %v851_v34 }
  0x8c   : > { %774 = vmatmul.f32.gmra.mxu2 %v2263_v46  ;;  %895 = vmatpush.msra.mxu0 %v850_v38  ;;  %v848_v46 = vld [vmem:[%s3273_s2 + $0x8] sm:$0xff] }
  0x8d   : > { %692 = vmatmul.f32.gmra.mxu0 %v2269_v48  ;;  %v878_v48 = vld [vmem:[%s3273_s2 + $0xf8] sm:$0xff] }
  0x8e   : > { %815 = vmatmul.f32.gmra.mxu3 %v2275_v50  ;;  %896 = vmatpush.msra.mxu0 %v849_v45  ;;  %v876_v50 = vld [vmem:[%s3273_s2 + $0xe8] sm:$0xff] }
  0x8f   : > { %924 = vmatpush.msra.mxu1 %v878_v48  ;;  %v863_v48 = vld [vmem:[%s3273_s2 + $0x80] sm:$0xff] }
  0x90   : > { %733 = vmatmul.f32.gmra.mxu1 %v2289_v54  ;;  %897 = vmatpush.msra.mxu0 %v848_v46  ;;  %v2532_v54 = vperm.slane %v2524_v52, 0 }
  0x91   : > { %925 = vmatpush.msra.mxu1 %v877_v49 }
  0x92   : > { %898 = vmatpush.msra.mxu0 %v847_v47 }
  0x93   : > { %926 = vmatpush.msra.mxu1 %v876_v50 }
  0x94   : > { %777 = vmatmul.f32.gmra.mxu2 %v2315_v63 }
  0x95   : > { %695 = vmatmul.f32.gmra.mxu0 %v2321_v3  ;;  %927 = vmatpush.msra.mxu1 %v875_v51 }
  0x96   : > { %818 = vmatmul.f32.gmra.mxu3 %v2327_v5  ;;  %v871_v5 = vld [vmem:[%s3273_s2 + $0xc0] sm:$0xff] }
  0x97   : > { %928 = vmatpush.msra.mxu1 %v874_v53 }
  0x98   : > { %736 = vmatmul.f32.gmra.mxu1 %v2341_v10 }
  0x99   : > { %929 = vmatpush.msra.mxu1 %v873_v56 }
  0x9b   : > { %930 = vmatpush.msra.mxu1 %v872_v60 }
  0x9c   : > { %780 = vmatmul.f32.gmra.mxu2 %v2367_v21 }
  0x9d   : > { %698 = vmatmul.f32.gmra.mxu0 %v2373_v24  ;;  %931 = vmatpush.msra.mxu1 %v871_v5 }
  0x9e   : > { %821 = vmatmul.f32.gmra.mxu3 %v2379_v26  ;;  %v868_v26 = vld [vmem:[%s3273_s2 + $0xa8] sm:$0xff] }
  0x9f   : > { %932 = vmatpush.msra.mxu1 %v870_v11 }
  0xa0   : > { %739 = vmatmul.f32.gmra.mxu1 %v2393_v31 }
  0xa1   : > { %933 = vmatpush.msra.mxu1 %v869_v20 }
  0xa3   : > { %934 = vmatpush.msra.mxu1 %v868_v26 }
  0xa4   : > { %783 = vmatmul.f32.gmra.mxu2 %v2401_v35  ;;  %v867_v35 = vld [vmem:[%s3273_s2 + $0xa0] sm:$0xff] }
  0xa5   : > { %701 = vmatmul.f32.gmra.mxu0 %v2404_v36  ;;  %935 = vmatpush.msra.mxu1 %v867_v35 }
  0xa6   : > { %824 = vmatmul.f32.gmra.mxu3 %v2407_v37 }
  0xa8   : > { %742 = vmatmul.f32.gmra.mxu1 %v2412_v39 }
  0xac   : > { %786 = vmatmul.f32.gmra.mxu2 %v2417_v40 }
  0xad   : > { %704 = vmatmul.f32.gmra.mxu0 %v2420_v41  ;;  %v866_v41 = vld [vmem:[%s3273_s2 + $0x98] sm:$0xff] }
  0xae   : > { %827 = vmatmul.f32.gmra.mxu3 %v2423_v42  ;;  %936 = vmatpush.msra.mxu1 %v866_v41 }
  0xb0   : > { %745 = vmatmul.f32.gmra.mxu1 %v2428_v43 }
  0xb1   : > { %937 = vmatpush.msra.mxu1 %v865_v2 }
  0xb2   : > { %v520_v55 = vpop.f32.mrf.mxu0 }
  0xb3   : > { %v521_v57 = vadd.f32 %v520_v55, %v2532_v54  ;;  %938 = vmatpush.msra.mxu1 %v864_v22 }
  0xb5   : > { %v561_v58 = vpop.f32.mrf.mxu1  ;;  %939 = vmatpush.msra.mxu1 %v863_v48 }
  0xb6   : > { %v562_v59 = vadd.f32 %v561_v58, %v521_v57 }
  0xb7   : > { %v602_v61 = vpop.f32.mrf.mxu2 }
  0xb8   : > { %v603_v63 = vadd.f32 %v602_v61, %v562_v59 }
  0xb9   : > { %v643_v0 = vpop.f32.mrf.mxu3 }
  0xba   : > { %v644_v3 = vadd.f32 %v643_v0, %v603_v63  ;;  %v523_v4 = vpop.f32.mrf.mxu0 }
  0xbb   : > { %v524_v7 = vadd.f32 %v523_v4, %v2532_v54 }
  0xbc   : > { %v831_v8 = vmax.f32 %v644_v3, 0.0 }
  0xbd   : > { %v564_v9 = vpop.f32.mrf.mxu1 }
  0xbe   : > { %v565_v10 = vadd.f32 %v564_v9, %v524_v7  ;;  %899 = vmatmul.f32.vlgmr.msra.gmra.mxu0 %v831_v8 }
  0xbf   : > { %v605_v12 = vpop.f32.mrf.mxu2 }
  0xc0   : > { %v606_v13 = vadd.f32 %v605_v12, %v565_v10  ;;  %v2577_v12 = vperm.slane %v2524_v52, 1 }
  0xc1   : > { %v646_v15 = vpop.f32.mrf.mxu3 }
  0xc2   : > { %v647_v17 = vadd.f32 %v646_v15, %v606_v13  ;;  %v526_v19 = vpop.f32.mrf.mxu0 }
  0xc3   : > { %v527_v21 = vadd.f32 %v526_v19, %v2532_v54 }
  0xc4   : > { %v833_v23 = vmax.f32 %v647_v17, 0.0 }
  0xc5   : > { %v567_v24 = vpop.f32.mrf.mxu1 }
  0xc6   : > { %v568_v25 = vadd.f32 %v567_v24, %v527_v21  ;;  %902 = vmatmul.f32.gmra.mxu0 %v833_v23 }
  0xc7   : > { %v608_v27 = vpop.f32.mrf.mxu2 }
  0xc8   : > { %v609_v28 = vadd.f32 %v608_v27, %v568_v25 }
  0xc9   : > { %v649_v29 = vpop.f32.mrf.mxu3 }
  0xca   : > { %v650_v31 = vadd.f32 %v649_v29, %v609_v28  ;;  %v529_v33 = vpop.f32.mrf.mxu0 }
  0xcb   : > { %v530_v36 = vadd.f32 %v529_v33, %v2532_v54 }
  0xcc   : > { %v835_v37 = vmax.f32 %v650_v31, 0.0 }
  0xcd   : > { %v570_v39 = vpop.f32.mrf.mxu1 }
  0xce   : > { %v571_v40 = vadd.f32 %v570_v39, %v530_v36  ;;  %905 = vmatmul.f32.gmra.mxu0 %v835_v37 }
  0xcf   : > { %v611_v42 = vpop.f32.mrf.mxu2 }
  0xd0   : > { %v612_v43 = vadd.f32 %v611_v42, %v571_v40 }
  0xd1   : > { %v652_v44 = vpop.f32.mrf.mxu3 }
  0xd2   : > { %v653_v62 = vadd.f32 %v652_v44, %v612_v43  ;;  %v532_v1 = vpop.f32.mrf.mxu0 }
  0xd3   : > { %v533_v6 = vadd.f32 %v532_v1, %v2532_v54 }
  0xd4   : > { %v837_v14 = vmax.f32 %v653_v62, 0.0 }
  0xd5   : > { %v573_v16 = vpop.f32.mrf.mxu1 }
  0xd6   : > { %v574_v18 = vadd.f32 %v573_v16, %v533_v6  ;;  %908 = vmatmul.f32.gmra.mxu0 %v837_v14 }
  0xd7   : > { %v614_v30 = vpop.f32.mrf.mxu2 }
  0xd8   : > { %v615_v32 = vadd.f32 %v614_v30, %v574_v18 }
  0xd9   : > { %v655_v34 = vpop.f32.mrf.mxu3 }
  0xda   : > { %v656_v38 = vadd.f32 %v655_v34, %v615_v32  ;;  %v535_v45 = vpop.f32.mrf.mxu0 }
  0xdb   : > { %v536_v46 = vadd.f32 %v535_v45, %v2532_v54 }
  0xdc   : > { %v839_v47 = vmax.f32 %v656_v38, 0.0 }
  0xdd   : > { %v576_v49 = vpop.f32.mrf.mxu1 }
  0xde   : > { %v577_v50 = vadd.f32 %v576_v49, %v536_v46  ;;  %911 = vmatmul.f32.gmra.mxu0 %v839_v47 }
  0xdf   : > { %v617_v51 = vpop.f32.mrf.mxu2 }
  0xe0   : > { %v618_v53 = vadd.f32 %v617_v51, %v577_v50 }
  0xe1   : > { %v658_v55 = vpop.f32.mrf.mxu3 }
  0xe2   : > { %v659_v56 = vadd.f32 %v658_v55, %v618_v53  ;;  %v538_v57 = vpop.f32.mrf.mxu0 }
  0xe3   : > { %v539_v58 = vadd.f32 %v538_v57, %v2532_v54 }
  0xe4   : > { %v841_v59 = vmax.f32 %v659_v56, 0.0 }
  0xe5   : > { %v579_v60 = vpop.f32.mrf.mxu1 }
  0xe6   : > { %v580_v61 = vadd.f32 %v579_v60, %v539_v58  ;;  %914 = vmatmul.f32.gmra.mxu0 %v841_v59  ;;  %v995_v60 = vld [vmem:[%s3274_s3 + $0xf0] sm:$0xff] }
  0xe7   : > { %v620_v63 = vpop.f32.mrf.mxu2  ;;  %1003 = vmatpush.msra.mxu2 %v995_v60 }
  0xe8   : > { %v621_v0 = vadd.f32 %v620_v63, %v580_v61  ;;  %v996_v61 = vld [vmem:[%s3274_s3 + $0xf8] sm:$0xff]  ;;  %v993_v63 = vld [vmem:[%s3274_s3 + $0xe0] sm:$0xff] }
  0xe9   : > { %v661_v3 = vpop.f32.mrf.mxu3  ;;  %1044 = vmatpush.msra.mxu3 %v996_v61  ;;  %1004 = vmatpush.msra.mxu2 %v993_v63 }
  0xea   : > { %v662_v4 = vadd.f32 %v661_v3, %v621_v0  ;;  %v541_v5 = vpop.f32.mrf.mxu0 }
  0xeb   : > { %v542_v7 = vadd.f32 %v541_v5, %v2532_v54 }
  0xec   : > { %v843_v8 = vmax.f32 %v662_v4, 0.0 }
  0xed   : > { %v582_v9 = vpop.f32.mrf.mxu1 }
  0xee   : > { %v583_v10 = vadd.f32 %v582_v9, %v542_v7  ;;  %917 = vmatmul.f32.gmra.mxu0 %v843_v8 }
  0xef   : > { %v623_v11 = vpop.f32.mrf.mxu2 }
  0xf0   : > { %v624_v13 = vadd.f32 %v623_v11, %v583_v10 }
  0xf1   : > { %v664_v15 = vpop.f32.mrf.mxu3 }
  0xf2   : > { %v665_v17 = vadd.f32 %v664_v15, %v624_v13  ;;  %v684_v19 = vpop.f32.mrf.mxu0  ;;  %v994_v13 = vld [vmem:[%s3274_s3 + $0xe8] sm:$0xff]  ;;  %v991_v15 = vld [vmem:[%s3274_s3 + $0xd0] sm:$0xff] }
  0xf3   : > { %v685_v20 = vadd.f32 %v684_v19, %v2577_v12  ;;  %1045 = vmatpush.msra.mxu3 %v994_v13  ;;  %1005 = vmatpush.msra.mxu2 %v991_v15  ;;  %v1226_v13 = vld [vmem:[%s3275_s4 + $0x3e8] sm:$0xff] }
  0xf4   : > { %v845_v21 = vmax.f32 %v665_v17, 0.0  ;;  %v992_v17 = vld [vmem:[%s3274_s3 + $0xd8] sm:$0xff]  ;;  %v1158_v15 = vld [vmem:[%s3275_s4 + $0x1c8] sm:$0xff] }
  0xf5   : > { %v725_v23 = vpop.f32.mrf.mxu1  ;;  %1046 = vmatpush.msra.mxu3 %v992_v17  ;;  %v1161_v17 = vld [vmem:[%s3275_s4 + $0x1e0] sm:$0xff] }
  0xf6   : > { %v726_v24 = vadd.f32 %v725_v23, %v685_v20  ;;  %920 = vmatmul.f32.gmra.mxu0 %v845_v21  ;;  %v989_v20 = vld [vmem:[%s3274_s3 + $0xc0] sm:$0xff] }
  0xf7   : > { %v766_v25 = vpop.f32.mrf.mxu2  ;;  %1006 = vmatpush.msra.mxu2 %v989_v20  ;;  %v1225_v20 = vld [vmem:[%s3275_s4 + $0x3e0] sm:$0xff]  ;;  %1239 = vmatpush.msrb.mxu0 %v1161_v17 }
  0xf8   : > { %v767_v54 = vadd.f32 %v766_v25, %v726_v24  ;;  %1280 = vmatpush.msrb.mxu1 %v1225_v20  ;;  %v1109_v20 = vld [vmem:[%s3275_s4 + $0x40] sm:$0xff] }
  0xf9   : > { %v807_v26 = vpop.f32.mrf.mxu3 }
  0xfa   : > { %v808_v27 = vadd.f32 %v807_v26, %v767_v54  ;;  %v687_v28 = vpop.f32.mrf.mxu0 }
  0xfb   : > { %v688_v29 = vadd.f32 %v687_v28, %v2577_v12 }
  0xfc   : > { %v832_v31 = vmax.f32 %v808_v27, 0.0 }
  0xfd   : > { %v728_v52 = vpop.f32.mrf.mxu1 }
  0xfe   : > { %v729_v33 = vadd.f32 %v728_v52, %v688_v29  ;;  %940 = vmatmul.f32.vlgmr.msra.gmra.mxu1 %v832_v31  ;;  %v990_v29 = vld [vmem:[%s3274_s3 + $0xc8] sm:$0xff]  ;;  %v987_v31 = vld [vmem:[%s3274_s3 + $0xb0] sm:$0xff]  ;;  %v988_v52 = vld [vmem:[%s3274_s3 + $0xb8] sm:$0xff] }
  0xff   : > { %v769_v35 = vpop.f32.mrf.mxu2  ;;  %1047 = vmatpush.msra.mxu3 %v990_v29  ;;  %1007 = vmatpush.msra.mxu2 %v987_v31  ;;  %v1217_v29 = vld [vmem:[%s3275_s4 + $0x3a0] sm:$0xff] }
 0x100   : > { %v770_v36 = vadd.f32 %v769_v35, %v729_v33 }
 0x101   : > { %v810_v37 = vpop.f32.mrf.mxu3  ;;  %1048 = vmatpush.msra.mxu3 %v988_v52 }
 0x102   : > { %v811_v39 = vadd.f32 %v810_v37, %v770_v36  ;;  %v690_v40 = vpop.f32.mrf.mxu0 }
 0x103   : > { %v691_v41 = vadd.f32 %v690_v40, %v2577_v12 }
 0x104   : > { %v834_v42 = vmax.f32 %v811_v39, 0.0 }
 0x105   : > { %v731_v43 = vpop.f32.mrf.mxu1 }
 0x106   : > { %v732_v44 = vadd.f32 %v731_v43, %v691_v41  ;;  %943 = vmatmul.f32.gmra.mxu1 %v834_v42  ;;  %v986_v42 = vld [vmem:[%s3274_s3 + $0xa8] sm:$0xff]  ;;  %v983_v43 = vld [vmem:[%s3274_s3 + $0x90] sm:$0xff] }
 0x107   : > { %v772_v62 = vpop.f32.mrf.mxu2  ;;  %1049 = vmatpush.msra.mxu3 %v986_v42  ;;  %v1209_v42 = vld [vmem:[%s3275_s4 + $0x360] sm:$0xff] }
 0x108   : > { %v773_v1 = vadd.f32 %v772_v62, %v732_v44  ;;  %v984_v44 = vld [vmem:[%s3274_s3 + $0x98] sm:$0xff]  ;;  %v981_v62 = vld [vmem:[%s3274_s3 + $0x80] sm:$0xff] }
 0x109   : > { %v813_v2 = vpop.f32.mrf.mxu3  ;;  %1050 = vmatpush.msra.mxu3 %v984_v44  ;;  %v1141_v44 = vld [vmem:[%s3275_s4 + $0x140] sm:$0xff] }
 0x10a   : > { %v814_v6 = vadd.f32 %v813_v2, %v773_v1  ;;  %v693_v14 = vpop.f32.mrf.mxu0  ;;  %v982_v1 = vld [vmem:[%s3274_s3 + $0x88] sm:$0xff]  ;;  %v979_v2 = vld [vmem:[%s3274_s3 + $0x70] sm:$0xff] }
 0x10b   : > { %v694_v16 = vadd.f32 %v693_v14, %v2577_v12  ;;  %1051 = vmatpush.msra.mxu3 %v982_v1  ;;  %v977_v14 = vld [vmem:[%s3274_s3 + $0x60] sm:$0xff] }
 0x10c   : > { %v836_v18 = vmax.f32 %v814_v6, 0.0  ;;  %v980_v6 = vld [vmem:[%s3274_s3 + $0x78] sm:$0xff]  ;;  %v1205_v1 = vld [vmem:[%s3275_s4 + $0x340] sm:$0xff] }
 0x10d   : > { %v734_v22 = vpop.f32.mrf.mxu1  ;;  %1052 = vmatpush.msra.mxu3 %v980_v6  ;;  %v1134_v6 = vld [vmem:[%s3275_s4 + $0x108] sm:$0xff] }
 0x10e   : > { %v735_v30 = vadd.f32 %v734_v22, %v694_v16  ;;  %946 = vmatmul.f32.gmra.mxu1 %v836_v18  ;;  %v978_v16 = vld [vmem:[%s3274_s3 + $0x68] sm:$0xff]  ;;  %v975_v18 = vld [vmem:[%s3274_s3 + $0x50] sm:$0xff]  ;;  %v976_v22 = vld [vmem:[%s3274_s3 + $0x58] sm:$0xff] }
 0x10f   : > { %v775_v32 = vpop.f32.mrf.mxu2  ;;  %1053 = vmatpush.msra.mxu3 %v978_v16 }
 0x110   : > { %v776_v34 = vadd.f32 %v775_v32, %v735_v30  ;;  %v973_v30 = vld [vmem:[%s3274_s3 + $0x40] sm:$0xff]  ;;  %v974_v32 = vld [vmem:[%s3274_s3 + $0x48] sm:$0xff] }
 0x111   : > { %v816_v38 = vpop.f32.mrf.mxu3  ;;  %1054 = vmatpush.msra.mxu3 %v976_v22  ;;  %v1198_v22 = vld [vmem:[%s3275_s4 + $0x308] sm:$0xff] }
 0x112   : > { %v817_v45 = vadd.f32 %v816_v38, %v776_v34  ;;  %v696_v46 = vpop.f32.mrf.mxu0  ;;  %v971_v34 = vld [vmem:[%s3274_s3 + $0x30] sm:$0xff]  ;;  %v972_v38 = vld [vmem:[%s3274_s3 + $0x38] sm:$0xff] }
 0x113   : > { %v697_v47 = vadd.f32 %v696_v46, %v2577_v12  ;;  %1055 = vmatpush.msra.mxu3 %v974_v32  ;;  %v970_v46 = vld [vmem:[%s3274_s3 + $0x28] sm:$0xff] }
 0x114   : > { %v838_v48 = vmax.f32 %v817_v45, 0.0  ;;  %v969_v45 = vld [vmem:[%s3274_s3 + $0x20] sm:$0xff] }
 0x115   : > { %v737_v49 = vpop.f32.mrf.mxu1  ;;  %1056 = vmatpush.msra.mxu3 %v972_v38  ;;  %v1133_v38 = vld [vmem:[%s3275_s4 + $0x100] sm:$0xff] }
 0x116   : > { %v738_v50 = vadd.f32 %v737_v49, %v697_v47  ;;  %949 = vmatmul.f32.gmra.mxu1 %v838_v48  ;;  %v967_v47 = vld [vmem:[%s3274_s3 + $0x10] sm:$0xff]  ;;  %v968_v48 = vld [vmem:[%s3274_s3 + $0x18] sm:$0xff]  ;;  %v965_v49 = vld [vmem:[%s3274_s3] sm:$0xff] }
 0x117   : > { %v778_v51 = vpop.f32.mrf.mxu2  ;;  %1057 = vmatpush.msra.mxu3 %v970_v46  ;;  %v1197_v46 = vld [vmem:[%s3275_s4 + $0x300] sm:$0xff] }
 0x118   : > { %v779_v53 = vadd.f32 %v778_v51, %v738_v50  ;;  %v966_v50 = vld [vmem:[%s3274_s3 + $0x8] sm:$0xff] }
 0x119   : > { %v819_v55 = vpop.f32.mrf.mxu3  ;;  %1058 = vmatpush.msra.mxu3 %v968_v48  ;;  %v1129_v48 = vld [vmem:[%s3275_s4 + $0xe0] sm:$0xff] }
 0x11a   : > { %v820_v56 = vadd.f32 %v819_v55, %v779_v53  ;;  %v699_v57 = vpop.f32.mrf.mxu0  ;;  %v2686_v55 = vld [vmem:[%s3277_s6] ss:$0 sm:$0xff] }
 0x11b   : > { %v700_v58 = vadd.f32 %v699_v57, %v2577_v12  ;;  %1059 = vmatpush.msra.mxu3 %v966_v50  ;;  %v1193_v50 = vld [vmem:[%s3275_s4 + $0x2e0] sm:$0xff] }
 0x11c   : > { %v840_v59 = vmax.f32 %v820_v56, 0.0 }
 0x11d   : > { %v740_v0 = vpop.f32.mrf.mxu1  ;;  %1362 = vmatpush.msrb.mxu3 %v1226_v13  ;;  %v1174_v13 = vld [vmem:[%s3275_s4 + $0x248] sm:$0xff] }
 0x11e   : > { %v741_v3 = vadd.f32 %v740_v0, %v700_v58  ;;  %952 = vmatmul.f32.gmra.mxu1 %v840_v59 }
 0x11f   : > { %v781_v4 = vpop.f32.mrf.mxu2 }
 0x120   : > { %v782_v5 = vadd.f32 %v781_v4, %v741_v3 }
 0x121   : > { %v822_v7 = vpop.f32.mrf.mxu3 }
 0x122   : > { %v823_v8 = vadd.f32 %v822_v7, %v782_v5  ;;  %v702_v9 = vpop.f32.mrf.mxu0 }
 0x123   : > { %v703_v10 = vadd.f32 %v702_v9, %v2577_v12 }
 0x124   : > { %v842_v11 = vmax.f32 %v823_v8, 0.0 }
 0x125   : > { %v743_v19 = vpop.f32.mrf.mxu1 }
 0x126   : > { %v744_v21 = vadd.f32 %v743_v19, %v703_v10  ;;  %955 = vmatmul.f32.gmra.mxu1 %v842_v11  ;;  %v1162_v11 = vld [vmem:[%s3275_s4 + $0x1e8] sm:$0xff] }
 0x127   : > { %v784_v23 = vpop.f32.mrf.mxu2  ;;  %v1222_v19 = vld [vmem:[%s3275_s4 + $0x3c8] sm:$0xff] }
 0x128   : > { %v785_v24 = vadd.f32 %v784_v23, %v744_v21  ;;  %v1154_v21 = vld [vmem:[%s3275_s4 + $0x1a8] sm:$0xff]  ;;  %v1157_v23 = vld [vmem:[%s3275_s4 + $0x1c0] sm:$0xff]  ;;  %1363 = vmatpush.msrb.mxu3 %v1222_v19 }
 0x129   : > { %v825_v25 = vpop.f32.mrf.mxu3  ;;  %1240 = vmatpush.msrb.mxu0 %v1157_v23  ;;  %v1106_v19 = vld [vmem:[%s3275_s4 + $0x28] sm:$0xff] }
 0x12a   : > { %v826_v54 = vadd.f32 %v825_v25, %v785_v24  ;;  %v705_v26 = vpop.f32.mrf.mxu0  ;;  %v1218_v24 = vld [vmem:[%s3275_s4 + $0x3a8] sm:$0xff]  ;;  %v1221_v25 = vld [vmem:[%s3275_s4 + $0x3c0] sm:$0xff] }
 0x12b   : > { %v706_v27 = vadd.f32 %v705_v26, %v2577_v12  ;;  %v985_v12 = vld [vmem:[%s3274_s3 + $0xa0] sm:$0xff]  ;;  %1281 = vmatpush.msrb.mxu1 %v1221_v25  ;;  %1364 = vmatpush.msrb.mxu3 %v1218_v24 }
 0x12c   : > { %v844_v28 = vmax.f32 %v826_v54, 0.0  ;;  %1008 = vmatpush.msra.mxu2 %v985_v12  ;;  %v1153_v54 = vld [vmem:[%s3275_s4 + $0x1a0] sm:$0xff]  ;;  %v1146_v12 = vld [vmem:[%s3275_s4 + $0x168] sm:$0xff] }
 0x12d   : > { %v746_v33 = vpop.f32.mrf.mxu1  ;;  %1241 = vmatpush.msrb.mxu0 %v1153_v54  ;;  %1282 = vmatpush.msrb.mxu1 %v1217_v29  ;;  %v1173_v24 = vld [vmem:[%s3275_s4 + $0x240] sm:$0xff] }
 0x12e   : > { %v747_v35 = vadd.f32 %v746_v33, %v706_v27  ;;  %958 = vmatmul.f32.gmra.mxu1 %v844_v28  ;;  %1009 = vmatpush.msra.mxu2 %v983_v43  ;;  %v1150_v27 = vld [vmem:[%s3275_s4 + $0x188] sm:$0xff]  ;;  %v1105_v25 = vld [vmem:[%s3275_s4 + $0x20] sm:$0xff] }
 0x12f   : > { %v787_v36 = vpop.f32.mrf.mxu2  ;;  %v1214_v28 = vld [vmem:[%s3275_s4 + $0x388] sm:$0xff]  ;;  %v1169_v54 = vld [vmem:[%s3275_s4 + $0x220] sm:$0xff] }
 0x130   : > { %v788_v37 = vadd.f32 %v787_v36, %v747_v35  ;;  %1010 = vmatpush.msra.mxu2 %v981_v62  ;;  %v1149_v35 = vld [vmem:[%s3275_s4 + $0x180] sm:$0xff]  ;;  %1365 = vmatpush.msrb.mxu3 %v1214_v28  ;;  %v1210_v36 = vld [vmem:[%s3275_s4 + $0x368] sm:$0xff] }
 0x131   : > { %v828_v39 = vpop.f32.mrf.mxu3  ;;  %1242 = vmatpush.msrb.mxu0 %v1149_v35  ;;  %v1138_v43 = vld [vmem:[%s3275_s4 + $0x128] sm:$0xff]  ;;  %v1101_v28 = vld [vmem:[%s3275_s4] sm:$0xff]  ;;  %v1224_v35 = vld [vmem:[%s3275_s4 + $0x3d8] sm:$0xff] }
 0x132   : > { %v829_v40 = vadd.f32 %v828_v39, %v788_v37  ;;  %1011 = vmatpush.msra.mxu2 %v979_v2  ;;  %v1213_v37 = vld [vmem:[%s3275_s4 + $0x380] sm:$0xff]  ;;  %v1142_v39 = vld [vmem:[%s3275_s4 + $0x148] sm:$0xff]  ;;  %1366 = vmatpush.msrb.mxu3 %v1210_v36  ;;  %v1227_v36 = vld [vmem:[%s3275_s4 + $0x3f0] sm:$0xff] }
 0x133   : > { %1283 = vmatpush.msrb.mxu1 %v1213_v37  ;;  %v1202_v62 = vld [vmem:[%s3275_s4 + $0x328] sm:$0xff]  ;;  %v1165_v29 = vld [vmem:[%s3275_s4 + $0x200] sm:$0xff]  ;;  %v1156_v37 = vld [vmem:[%s3275_s4 + $0x1b8] sm:$0xff] }
 0x134   : > { %v846_v41 = vmax.f32 %v829_v40, 0.0  ;;  %1012 = vmatpush.msra.mxu2 %v977_v14  ;;  %v1145_v40 = vld [vmem:[%s3275_s4 + $0x160] sm:$0xff] }
 0x135   : > { %1243 = vmatpush.msrb.mxu0 %v1145_v40  ;;  %1284 = vmatpush.msrb.mxu1 %v1209_v42  ;;  %v1137_v14 = vld [vmem:[%s3275_s4 + $0x120] sm:$0xff]  ;;  %v1220_v40 = vld [vmem:[%s3275_s4 + $0x3b8] sm:$0xff] }
 0x136   : > { %961 = vmatmul.f32.gmra.mxu1 %v846_v41  ;;  %1013 = vmatpush.msra.mxu2 %v975_v18  ;;  %v1206_v41 = vld [vmem:[%s3275_s4 + $0x348] sm:$0xff]  ;;  %v1152_v42 = vld [vmem:[%s3275_s4 + $0x198] sm:$0xff] }
 0x137   : > { %1367 = vmatpush.msrb.mxu3 %v1206_v41  ;;  %1244 = vmatpush.msrb.mxu0 %v1141_v44  ;;  %v1223_v41 = vld [vmem:[%s3275_s4 + $0x3d0] sm:$0xff]  ;;  %v1216_v44 = vld [vmem:[%s3275_s4 + $0x398] sm:$0xff] }
 0x138   : > { %1014 = vmatpush.msra.mxu2 %v973_v30  ;;  %1285 = vmatpush.msrb.mxu1 %v1205_v1  ;;  %v1201_v30 = vld [vmem:[%s3275_s4 + $0x320] sm:$0xff]  ;;  %v1148_v1 = vld [vmem:[%s3275_s4 + $0x178] sm:$0xff] }
 0x139   : > { %1368 = vmatpush.msrb.mxu3 %v1202_v62  ;;  %1245 = vmatpush.msrb.mxu0 %v1137_v14  ;;  %v1219_v62 = vld [vmem:[%s3275_s4 + $0x3b0] sm:$0xff]  ;;  %v997_v14 = vld [vmem:[%s3278_s7] sm:$0x3] }
 0x13a   : > { %1015 = vmatpush.msra.mxu2 %v971_v34  ;;  %v1130_v34 = vld [vmem:[%s3275_s4 + $0xe8] sm:$0xff]  ;;  %1286 = vmatpush.msrb.mxu1 %v1201_v30  ;;  %v1208_v30 = vld [vmem:[%s3275_s4 + $0x358] sm:$0xff] }
 0x13b   : > { %v900_v51 = vpop.f32.mrf.mxu0  ;;  %1369 = vmatpush.msrb.mxu3 %v1198_v22  ;;  %1246 = vmatpush.msrb.mxu0 %v1133_v38  ;;  %v1147_v22 = vld [vmem:[%s3275_s4 + $0x170] sm:$0xff] }
 0x13c   : > { %1016 = vmatpush.msra.mxu2 %v969_v45  ;;  %v901_v56 = vadd.f32 %v2686_v55, %v900_v51  ;;  %v1194_v45 = vld [vmem:[%s3275_s4 + $0x2e8] sm:$0xff]  ;;  %1287 = vmatpush.msrb.mxu1 %v1197_v46  ;;  %v1211_v38 = vld [vmem:[%s3275_s4 + $0x370] sm:$0xff] }
 0x13d   : > { %1370 = vmatpush.msrb.mxu3 %v1194_v45  ;;  %v1122_v51 = vld [vmem:[%s3275_s4 + $0xa8] sm:$0xff]  ;;  %1247 = vmatpush.msrb.mxu0 %v1129_v48  ;;  %v1140_v45 = vld [vmem:[%s3275_s4 + $0x138] sm:$0xff]  ;;  %v1143_v46 = vld [vmem:[%s3275_s4 + $0x150] sm:$0xff] }
 0x13e   : > { %1017 = vmatpush.msra.mxu2 %v967_v47  ;;  %v1126_v47 = vld [vmem:[%s3275_s4 + $0xc8] sm:$0xff]  ;;  %1288 = vmatpush.msrb.mxu1 %v1193_v50 }
 0x140   : > { %1018 = vmatpush.msra.mxu2 %v965_v49  ;;  %v1190_v49 = vld [vmem:[%s3275_s4 + $0x2c8] sm:$0xff] }
 0x141   : > { %1371 = vmatpush.msrb.mxu3 %v1190_v49 }
 0x142   : > { %1321 = vmatpush.msrb.mxu2 %v1162_v11  ;;  %v1113_v11 = vld [vmem:[%s3275_s4 + $0x60] sm:$0xff] }
 0x143   : > { %v903_v53 = vpop.f32.mrf.mxu0 }
 0x144   : > { %v904_v60 = vadd.f32 %v2686_v55, %v903_v53  ;;  %1322 = vmatpush.msrb.mxu2 %v1158_v15  ;;  %v1125_v53 = vld [vmem:[%s3275_s4 + $0xc0] sm:$0xff] }
 0x145   : > { %1248 = vmatpush.msrb.mxu0 %v1125_v53  ;;  %v1177_v15 = vld [vmem:[%s3275_s4 + $0x260] sm:$0xff] }
 0x146   : > { %1323 = vmatpush.msrb.mxu2 %v1154_v21 }
 0x148   : > { %1324 = vmatpush.msrb.mxu2 %v1150_v27  ;;  %v1166_v27 = vld [vmem:[%s3275_s4 + $0x208] sm:$0xff] }
 0x14a   : > { %1325 = vmatpush.msrb.mxu2 %v1146_v12  ;;  %v1163_v12 = vld [vmem:[%s3275_s4 + $0x1f0] sm:$0xff] }
 0x14b   : > { %v906_v59 = vpop.f32.mrf.mxu0 }
 0x14c   : > { %v907_v3 = vadd.f32 %v2686_v55, %v906_v59  ;;  %1326 = vmatpush.msrb.mxu2 %v1142_v39  ;;  %v1159_v39 = vld [vmem:[%s3275_s4 + $0x1d0] sm:$0xff] }
 0x14e   : > { %1327 = vmatpush.msrb.mxu2 %v1138_v43  ;;  %v1155_v43 = vld [vmem:[%s3275_s4 + $0x1b0] sm:$0xff] }
 0x150   : > { %1328 = vmatpush.msrb.mxu2 %v1134_v6  ;;  %v1212_v6 = vld [vmem:[%s3275_s4 + $0x378] sm:$0xff] }
 0x152   : > { %1329 = vmatpush.msrb.mxu2 %v1130_v34  ;;  %v2956_v34 = vperm.slane %v997_v14, 1 }
 0x153   : > { %v909_v0 = vpop.f32.mrf.mxu0 }
 0x154   : > { %v910_v8 = vadd.f32 %v2686_v55, %v909_v0  ;;  %1330 = vmatpush.msrb.mxu2 %v1126_v47  ;;  %v1182_v0 = vld [vmem:[%s3275_s4 + $0x288] sm:$0xff]  ;;  %v1204_v47 = vld [vmem:[%s3275_s4 + $0x338] sm:$0xff] }
 0x156   : > { %1331 = vmatpush.msrb.mxu2 %v1122_v51 }
 0x15b   : > { %v912_v7 = vpop.f32.mrf.mxu0 }
 0x15c   : > { %v913_v26 = vadd.f32 %v2686_v55, %v912_v7 }
 0x163   : > { %v915_v31 = vpop.f32.mrf.mxu0 }
 0x164   : > { %v916_v2 = vadd.f32 %v2686_v55, %v915_v31  ;;  %v1164_v31 = vld [vmem:[%s3275_s4 + $0x1f8] sm:$0xff] }
 0x16b   : > { %v918_v32 = vpop.f32.mrf.mxu0 }
 0x173   : > { %v921_v7 = vpop.f32.mrf.mxu0 }
 0x174   : > { %v922_v17 = vadd.f32 %v2686_v55, %v921_v7 }
 0x17b   : > { %v941_v57 = vpop.f32.mrf.mxu1 }
 0x17c   : > { %v942_v58 = vadd.f32 %v941_v57, %v901_v56  ;;  %v919_v56 = vadd.f32 %v2686_v55, %v918_v32  ;;  %v1186_v57 = vld [vmem:[%s3275_s4 + $0x2a8] sm:$0xff]  ;;  %v2954_v32 = vperm.slane %v997_v14, 0  ;;  %v1108_v14 = vld [vmem:[%s3275_s4 + $0x38] sm:$0xff] }
 0x17d   : > { %1372 = vmatpush.msrb.mxu3 %v1186_v57  ;;  %v1170_v55 = vld [vmem:[%s3275_s4 + $0x228] sm:$0xff]  ;;  %v1207_v57 = vld [vmem:[%s3275_s4 + $0x350] sm:$0xff] }
 0x17e   : > { %1019 = vmatmul.f32.vlgmr.msra.gmra.mxu2 %v942_v58  ;;  %1060 = vmatmul.f32.vlgmr.msra.gmra.mxu3 %v942_v58  ;;  %v1189_v58 = vld [vmem:[%s3275_s4 + $0x2c0] sm:$0xff] }
 0x17f   : > { %1289 = vmatpush.msrb.mxu1 %v1189_v58  ;;  %1373 = vmatpush.msrb.mxu3 %v1182_v0  ;;  %v1136_v58 = vld [vmem:[%s3275_s4 + $0x118] sm:$0xff]  ;;  %v1135_v0 = vld [vmem:[%s3275_s4 + $0x110] sm:$0xff] }
 0x183   : > { %v944_v61 = vpop.f32.mrf.mxu1 }
 0x184   : > { %v945_v63 = vadd.f32 %v944_v61, %v904_v60  ;;  %v1118_v61 = vld [vmem:[%s3275_s4 + $0x88] sm:$0xff] }
 0x185   : > { %1332 = vmatpush.msrb.mxu2 %v1118_v61  ;;  %v1203_v61 = vld [vmem:[%s3275_s4 + $0x330] sm:$0xff] }
 0x186   : > { %1022 = vmatmul.f32.gmra.mxu2 %v945_v63  ;;  %1063 = vmatmul.f32.gmra.mxu3 %v945_v63  ;;  %v1121_v63 = vld [vmem:[%s3275_s4 + $0xa0] sm:$0xff] }
 0x187   : > { %1249 = vmatpush.msrb.mxu0 %v1121_v63  ;;  %v1132_v63 = vld [vmem:[%s3275_s4 + $0xf8] sm:$0xff] }
 0x18b   : > { %v947_v4 = vpop.f32.mrf.mxu1 }
 0x18c   : > { %v948_v5 = vadd.f32 %v947_v4, %v907_v3  ;;  %v1185_v3 = vld [vmem:[%s3275_s4 + $0x2a0] sm:$0xff]  ;;  %v1114_v4 = vld [vmem:[%s3275_s4 + $0x68] sm:$0xff] }
 0x18d   : > { %1290 = vmatpush.msrb.mxu1 %v1185_v3  ;;  %1333 = vmatpush.msrb.mxu2 %v1114_v4  ;;  %v1196_v3 = vld [vmem:[%s3275_s4 + $0x2f8] sm:$0xff] }
 0x18e   : > { %1025 = vmatmul.f32.gmra.mxu2 %v948_v5  ;;  %1066 = vmatmul.f32.gmra.mxu3 %v948_v5  ;;  %v1117_v5 = vld [vmem:[%s3275_s4 + $0x80] sm:$0xff] }
 0x18f   : > { %1250 = vmatpush.msrb.mxu0 %v1117_v5 }
 0x191   : > { %1251 = vmatpush.msrb.mxu0 %v1113_v11  ;;  %v1199_v11 = vld [vmem:[%s3275_s4 + $0x310] sm:$0xff] }
 0x193   : > { %v950_v9 = vpop.f32.mrf.mxu1  ;;  %1252 = vmatpush.msrb.mxu0 %v1109_v20  ;;  %v1124_v20 = vld [vmem:[%s3275_s4 + $0xb8] sm:$0xff] }
 0x194   : > { %v951_v10 = vadd.f32 %v950_v9, %v910_v8  ;;  %v1178_v8 = vld [vmem:[%s3275_s4 + $0x268] sm:$0xff]  ;;  %v1181_v9 = vld [vmem:[%s3275_s4 + $0x280] sm:$0xff] }
 0x195   : > { %1374 = vmatpush.msrb.mxu3 %v1178_v8  ;;  %1291 = vmatpush.msrb.mxu1 %v1181_v9 }
 0x196   : > { %1028 = vmatmul.f32.gmra.mxu2 %v951_v10  ;;  %1069 = vmatmul.f32.gmra.mxu3 %v951_v10  ;;  %v1110_v10 = vld [vmem:[%s3275_s4 + $0x48] sm:$0xff] }
 0x197   : > { %1334 = vmatpush.msrb.mxu2 %v1110_v10  ;;  %1375 = vmatpush.msrb.mxu3 %v1174_v13  ;;  %v1128_v13 = vld [vmem:[%s3275_s4 + $0xd8] sm:$0xff] }
 0x198   : > { %1292 = vmatpush.msrb.mxu1 %v1177_v15  ;;  %1253 = vmatpush.msrb.mxu0 %v1105_v25  ;;  %v1131_v15 = vld [vmem:[%s3275_s4 + $0xf0] sm:$0xff] }
 0x199   : > { %1335 = vmatpush.msrb.mxu2 %v1106_v19  ;;  %1376 = vmatpush.msrb.mxu3 %v1170_v55  ;;  %v1195_v19 = vld [vmem:[%s3275_s4 + $0x2f0] sm:$0xff] }
 0x19a   : > { %1293 = vmatpush.msrb.mxu1 %v1173_v24  ;;  %1254 = vmatpush.msrb.mxu0 %v1101_v28  ;;  %v1191_v28 = vld [vmem:[%s3275_s4 + $0x2d0] sm:$0xff] }
 0x19b   : > { %v953_v52 = vpop.f32.mrf.mxu1  ;;  %1377 = vmatpush.msrb.mxu3 %v1166_v27 }
 0x19c   : > { %v954_v33 = vadd.f32 %v953_v52, %v913_v26  ;;  %1294 = vmatpush.msrb.mxu1 %v1169_v54  ;;  %v1102_v26 = vld [vmem:[%s3275_s4 + $0x8] sm:$0xff]  ;;  %v1228_v52 = vld [vmem:[%s3275_s4 + $0x3f8] sm:$0xff]  ;;  %1403 = vmatpush.msra.mxu0 %v1163_v12 }
 0x19d   : > { %1336 = vmatpush.msrb.mxu2 %v1102_v26  ;;  %1526 = vmatpush.msra.mxu3 %v1228_v52  ;;  %v1184_v52 = vld [vmem:[%s3275_s4 + $0x298] sm:$0xff] }
 0x19e   : > { %1031 = vmatmul.f32.gmra.mxu2 %v954_v33  ;;  %1072 = vmatmul.f32.gmra.mxu3 %v954_v33  ;;  %v1160_v33 = vld [vmem:[%s3275_s4 + $0x1d8] sm:$0xff] }
 0x19f   : > { %1295 = vmatpush.msrb.mxu1 %v1165_v29  ;;  %1485 = vmatpush.msra.mxu2 %v1164_v31  ;;  %v1120_v29 = vld [vmem:[%s3275_s4 + $0x98] sm:$0xff]  ;;  %v1123_v31 = vld [vmem:[%s3275_s4 + $0xb0] sm:$0xff] }
 0x1a0   : > { %1527 = vmatpush.msra.mxu3 %v1224_v35  ;;  %1404 = vmatpush.msra.mxu0 %v1159_v39  ;;  %v1116_v12 = vld [vmem:[%s3275_s4 + $0x78] sm:$0xff]  ;;  %v1119_v35 = vld [vmem:[%s3275_s4 + $0x90] sm:$0xff] }
 0x1a1   : > { %1486 = vmatpush.msra.mxu2 %v1160_v33  ;;  %1444 = vmatpush.msra.mxu1 %v1227_v36  ;;  %v1187_v33 = vld [vmem:[%s3275_s4 + $0x2b0] sm:$0xff]  ;;  %v1180_v36 = vld [vmem:[%s3275_s4 + $0x278] sm:$0xff] }
 0x1a2   : > { %1528 = vmatpush.msra.mxu3 %v1220_v40  ;;  %1405 = vmatpush.msra.mxu0 %v1155_v43 }
 0x1a3   : > { %v956_v16 = vpop.f32.mrf.mxu1  ;;  %1487 = vmatpush.msra.mxu2 %v1156_v37  ;;  %1445 = vmatpush.msra.mxu1 %v1223_v41 }
 0x1a4   : > { %v957_v18 = vadd.f32 %v956_v16, %v916_v2  ;;  %1529 = vmatpush.msra.mxu3 %v1216_v44  ;;  %v1151_v2 = vld [vmem:[%s3275_s4 + $0x190] sm:$0xff] }
 0x1a5   : > { %1488 = vmatpush.msra.mxu2 %v1152_v42  ;;  %1446 = vmatpush.msra.mxu1 %v1219_v62  ;;  %v1215_v16 = vld [vmem:[%s3275_s4 + $0x390] sm:$0xff]  ;;  %v1112_v62 = vld [vmem:[%s3275_s4 + $0x58] sm:$0xff] }
 0x1a6   : > { %1034 = vmatmul.f32.gmra.mxu2 %v957_v18  ;;  %1075 = vmatmul.f32.gmra.mxu3 %v957_v18  ;;  %v1144_v18 = vld [vmem:[%s3275_s4 + $0x158] sm:$0xff]  ;;  %v1183_v44 = vld [vmem:[%s3275_s4 + $0x290] sm:$0xff] }
 0x1a7   : > { %1489 = vmatpush.msra.mxu2 %v1148_v1  ;;  %1406 = vmatpush.msra.mxu0 %v1151_v2  ;;  %v1115_v1 = vld [vmem:[%s3275_s4 + $0x70] sm:$0xff]  ;;  %v1176_v2 = vld [vmem:[%s3275_s4 + $0x258] sm:$0xff] }
 0x1a8   : > { %1530 = vmatpush.msra.mxu3 %v1212_v6  ;;  %1447 = vmatpush.msra.mxu1 %v1215_v16  ;;  %v1179_v6 = vld [vmem:[%s3275_s4 + $0x270] sm:$0xff] }
 0x1a9   : > { %1490 = vmatpush.msra.mxu2 %v1144_v18  ;;  %1407 = vmatpush.msra.mxu0 %v1147_v22  ;;  %v1111_v16 = vld [vmem:[%s3275_s4 + $0x50] sm:$0xff]  ;;  %v1172_v18 = vld [vmem:[%s3275_s4 + $0x238] sm:$0xff] }
 0x1aa   : > { %1531 = vmatpush.msra.mxu3 %v1208_v30  ;;  %1448 = vmatpush.msra.mxu1 %v1211_v38  ;;  %v1175_v22 = vld [vmem:[%s3275_s4 + $0x250] sm:$0xff]  ;;  %v1104_v30 = vld [vmem:[%s3275_s4 + $0x18] sm:$0xff] }
 0x1ab   : > { %v959_v59 = vpop.f32.mrf.mxu1  ;;  %1491 = vmatpush.msra.mxu2 %v1140_v45  ;;  %1408 = vmatpush.msra.mxu0 %v1143_v46  ;;  %v1107_v46 = vld [vmem:[%s3275_s4 + $0x30] sm:$0xff] }
 0x1ac   : > { %v960_v60 = vadd.f32 %v959_v59, %v919_v56  ;;  %1532 = vmatpush.msra.mxu3 %v1204_v47  ;;  %1449 = vmatpush.msra.mxu1 %v1207_v57  ;;  %v1139_v59 = vld [vmem:[%s3275_s4 + $0x130] sm:$0xff]  ;;  %v1168_v47 = vld [vmem:[%s3275_s4 + $0x218] sm:$0xff] }
 0x1ad   : > { %1492 = vmatpush.msra.mxu2 %v1136_v58  ;;  %1409 = vmatpush.msra.mxu0 %v1139_v59  ;;  %v1103_v58 = vld [vmem:[%s3275_s4 + $0x10] sm:$0xff] }
 0x1ae   : > { %1037 = vmatmul.f32.gmra.mxu2 %v960_v60  ;;  %1078 = vmatmul.f32.gmra.mxu3 %v960_v60  ;;  %v1200_v60 = vld [vmem:[%s3275_s4 + $0x318] sm:$0xff]  ;;  %v1167_v59 = vld [vmem:[%s3275_s4 + $0x210] sm:$0xff] }
 0x1af   : > { %1533 = vmatpush.msra.mxu3 %v1200_v60  ;;  %1450 = vmatpush.msra.mxu1 %v1203_v61 }
 0x1b0   : > { %1493 = vmatpush.msra.mxu2 %v1132_v63  ;;  %1410 = vmatpush.msra.mxu0 %v1135_v0 }
 0x1b1   : > { %1534 = vmatpush.msra.mxu3 %v1196_v3  ;;  %1451 = vmatpush.msra.mxu1 %v1199_v11 }
 0x1b2   : > { %1494 = vmatpush.msra.mxu2 %v1128_v13  ;;  %1411 = vmatpush.msra.mxu0 %v1131_v15 }
 0x1b3   : > { %v962_v21 = vpop.f32.mrf.mxu1  ;;  %1452 = vmatpush.msra.mxu1 %v1195_v19 }
 0x1b4   : > { %v963_v23 = vadd.f32 %v962_v21, %v922_v17  ;;  %v1192_v17 = vld [vmem:[%s3275_s4 + $0x2d8] sm:$0xff]  ;;  %v1127_v21 = vld [vmem:[%s3275_s4 + $0xd0] sm:$0xff]  ;;  %1495 = vmatpush.msra.mxu2 %v1124_v20 }
 0x1b5   : > { %1535 = vmatpush.msra.mxu3 %v1192_v17  ;;  %1412 = vmatpush.msra.mxu0 %v1127_v21 }
 0x1b6   : > { %1040 = vmatmul.f32.gmra.mxu2 %v963_v23  ;;  %1081 = vmatmul.f32.gmra.mxu3 %v963_v23  ;;  %v1188_v23 = vld [vmem:[%s3275_s4 + $0x2b8] sm:$0xff] }
 0x1b7   : > { %1536 = vmatpush.msra.mxu3 %v1188_v23  ;;  %1453 = vmatpush.msra.mxu1 %v1191_v28 }
 0x1b8   : > { %1496 = vmatpush.msra.mxu2 %v1120_v29  ;;  %1413 = vmatpush.msra.mxu0 %v1123_v31 }
 0x1b9   : > { %1537 = vmatpush.msra.mxu3 %v1184_v52  ;;  %1454 = vmatpush.msra.mxu1 %v1187_v33 }
 0x1ba   : > { %1497 = vmatpush.msra.mxu2 %v1116_v12  ;;  %1414 = vmatpush.msra.mxu0 %v1119_v35 }
 0x1bb   : > { %1538 = vmatpush.msra.mxu3 %v1180_v36  ;;  %1455 = vmatpush.msra.mxu1 %v1183_v44 }
 0x1bc   : > { %1498 = vmatpush.msra.mxu2 %v1112_v62  ;;  %1415 = vmatpush.msra.mxu0 %v1115_v1 }
 0x1bd   : > { %1539 = vmatpush.msra.mxu3 %v1176_v2  ;;  %1456 = vmatpush.msra.mxu1 %v1179_v6 }
 0x1be   : > { %1499 = vmatpush.msra.mxu2 %v1108_v14  ;;  %1416 = vmatpush.msra.mxu0 %v1111_v16 }
 0x1bf   : > { %1540 = vmatpush.msra.mxu3 %v1172_v18  ;;  %1457 = vmatpush.msra.mxu1 %v1175_v22 }
 0x1c0   : > { %1500 = vmatpush.msra.mxu2 %v1104_v30  ;;  %1417 = vmatpush.msra.mxu0 %v1107_v46 }
 0x1c1   : > { %1541 = vmatpush.msra.mxu3 %v1168_v47 }
 0x1c2   : > { %1418 = vmatpush.msra.mxu0 %v1103_v58 }
 0x201   : > { %v1020_v48 = vpop.f32.mrf.mxu2  ;;  %v1061_v49 = vpop.f32.mrf.mxu3 }
 0x202   : > { %v1021_v50 = vadd.f32 %v1020_v48, %v2954_v32  ;;  %v1062_v51 = vadd.f32 %v1061_v49, %v2956_v34 }
 0x204   : > { %v2972_v53 = vmax.f32 %v1021_v50, 0.0  ;;  %v2974_v56 = vmax.f32 %v1062_v51, 0.0  ;;  %v1171_v50 = vld [vmem:[%s3275_s4 + $0x230] sm:$0xff] }
 0x205   : > { %1458 = vmatpush.msra.mxu1 %v1171_v50 }
 0x206   : > { %1255 = vmatmul.f32.vlgmr.msrb.gmra.mxu0 %v2972_v53  ;;  %1296 = vmatmul.f32.vlgmr.msrb.gmra.mxu1 %v2974_v56 }
 0x207   : > { %1337 = vmatmul.f32.vlgmr.msrb.gmra.mxu2 %v2972_v53  ;;  %1378 = vmatmul.f32.vlgmr.msrb.gmra.mxu3 %v2974_v56 }
 0x208   : > { %1459 = vmatpush.msra.mxu1 %v1167_v59 }
 0x209   : > { %v1023_v4 = vpop.f32.mrf.mxu2  ;;  %v1064_v5 = vpop.f32.mrf.mxu3 }
 0x20a   : > { %v1024_v7 = vadd.f32 %v1023_v4, %v2954_v32  ;;  %v1065_v8 = vadd.f32 %v1064_v5, %v2956_v34 }
 0x20c   : > { %v3006_v9 = vmax.f32 %v1024_v7, 0.0  ;;  %v3008_v10 = vmax.f32 %v1065_v8, 0.0 }
 0x20e   : > { %1258 = vmatmul.f32.gmra.mxu0 %v3006_v9  ;;  %1299 = vmatmul.f32.gmra.mxu1 %v3008_v10 }
 0x20f   : > { %1340 = vmatmul.f32.gmra.mxu2 %v3006_v9  ;;  %1381 = vmatmul.f32.gmra.mxu3 %v3008_v10 }
 0x211   : > { %v1026_v55 = vpop.f32.mrf.mxu2  ;;  %v1067_v24 = vpop.f32.mrf.mxu3 }
 0x212   : > { %v1027_v25 = vadd.f32 %v1026_v55, %v2954_v32  ;;  %v1068_v54 = vadd.f32 %v1067_v24, %v2956_v34 }
 0x214   : > { %v3040_v26 = vmax.f32 %v1027_v25, 0.0  ;;  %v3042_v27 = vmax.f32 %v1068_v54, 0.0 }
 0x216   : > { %1261 = vmatmul.f32.gmra.mxu0 %v3040_v26  ;;  %1302 = vmatmul.f32.gmra.mxu1 %v3042_v27 }
 0x217   : > { %1343 = vmatmul.f32.gmra.mxu2 %v3040_v26  ;;  %1384 = vmatmul.f32.gmra.mxu3 %v3042_v27 }
 0x219   : > { %v1029_v37 = vpop.f32.mrf.mxu2  ;;  %v1070_v39 = vpop.f32.mrf.mxu3 }
 0x21a   : > { %v1030_v40 = vadd.f32 %v1029_v37, %v2954_v32  ;;  %v1071_v41 = vadd.f32 %v1070_v39, %v2956_v34 }
 0x21c   : > { %v3074_v42 = vmax.f32 %v1030_v40, 0.0  ;;  %v3076_v43 = vmax.f32 %v1071_v41, 0.0 }
 0x21e   : > { %1264 = vmatmul.f32.gmra.mxu0 %v3074_v42  ;;  %1305 = vmatmul.f32.gmra.mxu1 %v3076_v43 }
 0x21f   : > { %1346 = vmatmul.f32.gmra.mxu2 %v3074_v42  ;;  %1387 = vmatmul.f32.gmra.mxu3 %v3076_v43 }
 0x221   : > { %v1032_v38 = vpop.f32.mrf.mxu2  ;;  %v1073_v45 = vpop.f32.mrf.mxu3 }
 0x222   : > { %v1033_v48 = vadd.f32 %v1032_v38, %v2954_v32  ;;  %v1074_v49 = vadd.f32 %v1073_v45, %v2956_v34 }
 0x224   : > { %v1093_v51 = vmax.f32 %v1033_v48, 0.0  ;;  %v1094_v57 = vmax.f32 %v1074_v49, 0.0 }
 0x226   : > { %1267 = vmatmul.f32.gmra.mxu0 %v1093_v51  ;;  %1308 = vmatmul.f32.gmra.mxu1 %v1094_v57 }
 0x227   : > { %1349 = vmatmul.f32.gmra.mxu2 %v1093_v51  ;;  %1390 = vmatmul.f32.gmra.mxu3 %v1094_v57 }
 0x229   : > { %v1035_v60 = vpop.f32.mrf.mxu2  ;;  %v1076_v61 = vpop.f32.mrf.mxu3 }
 0x22a   : > { %v1036_v63 = vadd.f32 %v1035_v60, %v2954_v32  ;;  %v1077_v0 = vadd.f32 %v1076_v61, %v2956_v34 }
 0x22c   : > { %v1095_v3 = vmax.f32 %v1036_v63, 0.0  ;;  %v1096_v4 = vmax.f32 %v1077_v0, 0.0 }
 0x22e   : > { %1270 = vmatmul.f32.gmra.mxu0 %v1095_v3  ;;  %1311 = vmatmul.f32.gmra.mxu1 %v1096_v4 }
 0x22f   : > { %1352 = vmatmul.f32.gmra.mxu2 %v1095_v3  ;;  %1393 = vmatmul.f32.gmra.mxu3 %v1096_v4 }
 0x231   : > { %v1038_v5 = vpop.f32.mrf.mxu2  ;;  %v1079_v7 = vpop.f32.mrf.mxu3 }
 0x232   : > { %v1039_v8 = vadd.f32 %v1038_v5, %v2954_v32  ;;  %v1080_v11 = vadd.f32 %v1079_v7, %v2956_v34 }
 0x234   : > { %v1097_v13 = vmax.f32 %v1039_v8, 0.0  ;;  %v1098_v15 = vmax.f32 %v1080_v11, 0.0 }
 0x236   : > { %1273 = vmatmul.f32.gmra.mxu0 %v1097_v13  ;;  %1314 = vmatmul.f32.gmra.mxu1 %v1098_v15 }
 0x237   : > { %1355 = vmatmul.f32.gmra.mxu2 %v1097_v13  ;;  %1396 = vmatmul.f32.gmra.mxu3 %v1098_v15 }
 0x239   : > { %v1041_v17 = vpop.f32.mrf.mxu2  ;;  %v1082_v19 = vpop.f32.mrf.mxu3 }
 0x23a   : > { %v1042_v20 = vadd.f32 %v1041_v17, %v2954_v32  ;;  %v1083_v21 = vadd.f32 %v1082_v19, %v2956_v34  ;;  %v3154_v32 = vld [vmem:[%s3279_s8] sm:$0xf] }
 0x23b   : > { %v3158_v34 = vperm.slane %v3154_v32, 0  ;;  %v3164_v24 = vperm.slane %v3154_v32, 1 }
 0x23c   : > { %v1099_v23 = vmax.f32 %v1042_v20, 0.0  ;;  %v1100_v55 = vmax.f32 %v1083_v21, 0.0 }
 0x23e   : > { %1276 = vmatmul.f32.gmra.mxu0 %v1099_v23  ;;  %1317 = vmatmul.f32.gmra.mxu1 %v1100_v55 }
 0x23f   : > { %1358 = vmatmul.f32.gmra.mxu2 %v1099_v23  ;;  %1399 = vmatmul.f32.gmra.mxu3 %v1100_v55 }
 0x246   : > { %1419 = vmatmul.f32.vlgmr.msra.gmra.mxu0 %v2972_v53  ;;  %1460 = vmatmul.f32.vlgmr.msra.gmra.mxu1 %v2974_v56 }
 0x247   : > { %1501 = vmatmul.f32.vlgmr.msra.gmra.mxu2 %v2972_v53  ;;  %1542 = vmatmul.f32.vlgmr.msra.gmra.mxu3 %v2974_v56 }
 0x24e   : > { %1422 = vmatmul.f32.gmra.mxu0 %v3006_v9  ;;  %1463 = vmatmul.f32.gmra.mxu1 %v3008_v10 }
 0x24f   : > { %1504 = vmatmul.f32.gmra.mxu2 %v3006_v9  ;;  %1545 = vmatmul.f32.gmra.mxu3 %v3008_v10 }
 0x256   : > { %1425 = vmatmul.f32.gmra.mxu0 %v3040_v26  ;;  %1466 = vmatmul.f32.gmra.mxu1 %v3042_v27 }
 0x257   : > { %1507 = vmatmul.f32.gmra.mxu2 %v3040_v26  ;;  %1548 = vmatmul.f32.gmra.mxu3 %v3042_v27 }
 0x25e   : > { %1428 = vmatmul.f32.gmra.mxu0 %v3074_v42  ;;  %1469 = vmatmul.f32.gmra.mxu1 %v3076_v43 }
 0x25f   : > { %1510 = vmatmul.f32.gmra.mxu2 %v3074_v42  ;;  %1551 = vmatmul.f32.gmra.mxu3 %v3076_v43 }
 0x266   : > { %1431 = vmatmul.f32.gmra.mxu0 %v1093_v51  ;;  %1472 = vmatmul.f32.gmra.mxu1 %v1094_v57 }
 0x267   : > { %1513 = vmatmul.f32.gmra.mxu2 %v1093_v51  ;;  %1554 = vmatmul.f32.gmra.mxu3 %v1094_v57 }
 0x26e   : > { %1434 = vmatmul.f32.gmra.mxu0 %v1095_v3  ;;  %1475 = vmatmul.f32.gmra.mxu1 %v1096_v4 }
 0x26f   : > { %1516 = vmatmul.f32.gmra.mxu2 %v1095_v3  ;;  %1557 = vmatmul.f32.gmra.mxu3 %v1096_v4 }
 0x276   : > { %1437 = vmatmul.f32.gmra.mxu0 %v1097_v13  ;;  %1478 = vmatmul.f32.gmra.mxu1 %v1098_v15 }
 0x277   : > { %1519 = vmatmul.f32.gmra.mxu2 %v1097_v13  ;;  %1560 = vmatmul.f32.gmra.mxu3 %v1098_v15 }
 0x27e   : > { %1440 = vmatmul.f32.gmra.mxu0 %v1099_v23  ;;  %1481 = vmatmul.f32.gmra.mxu1 %v1100_v55 }
 0x27f   : > { %1522 = vmatmul.f32.gmra.mxu2 %v1099_v23  ;;  %1563 = vmatmul.f32.gmra.mxu3 %v1100_v55  ;;  %v3198_v55 = vperm.slane %v3154_v32, 2 }
 0x283   : > { %v1256_v53 = vpop.f32.mrf.mxu0  ;;  %v1297_v56 = vpop.f32.mrf.mxu1 }
 0x284   : > { %v1257_v9 = vadd.f32 %v1256_v53, %v3158_v34 }
 0x286   : > { %v1298_v10 = vadd.f32 %v1297_v56, %v1257_v9 }
 0x288   : > { %1567 = vst [vmem:[%s3166_s25] sm:$0xff] %v1298_v10 }
 0x28a   : > { %v1338_v25 = vpop.f32.mrf.mxu2  ;;  %v1379_v54 = vpop.f32.mrf.mxu3 }
 0x28b   : > { %v1339_v26 = vadd.f32 %v1338_v25, %v3164_v24  ;;  %v1259_v27 = vpop.f32.mrf.mxu0  ;;  %v1300_v28 = vpop.f32.mrf.mxu1 }
 0x28c   : > { %v1260_v29 = vadd.f32 %v1259_v27, %v3158_v34  ;;  %v3204_v27 = vperm.slane %v3154_v32, 3 }
 0x28d   : > { %v1380_v31 = vadd.f32 %v1379_v54, %v1339_v26 }
 0x28e   : > { %v1301_v52 = vadd.f32 %v1300_v28, %v1260_v29 }
 0x28f   : > { %1568 = vst [vmem:[%s3166_s25 + $0x8] sm:$0xff] %v1380_v31 }
 0x290   : > { %1571 = vst [vmem:[%s3166_s25 + $0x20] sm:$0xff] %v1301_v52 }
 0x292   : > { %v1341_v33 = vpop.f32.mrf.mxu2  ;;  %v1382_v12 = vpop.f32.mrf.mxu3 }
 0x293   : > { %v1342_v35 = vadd.f32 %v1341_v33, %v3164_v24  ;;  %v1262_v36 = vpop.f32.mrf.mxu0  ;;  %v1303_v37 = vpop.f32.mrf.mxu1 }
 0x294   : > { %v1263_v39 = vadd.f32 %v1262_v36, %v3158_v34 }
 0x295   : > { %v1383_v40 = vadd.f32 %v1382_v12, %v1342_v35 }
 0x296   : > { %v1304_v41 = vadd.f32 %v1303_v37, %v1263_v39 }
 0x297   : > { %1572 = vst [vmem:[%s3166_s25 + $0x28] sm:$0xff] %v1383_v40 }
 0x298   : > { %1575 = vst [vmem:[%s3166_s25 + $0x40] sm:$0xff] %v1304_v41 }
 0x29a   : > { %v1344_v42 = vpop.f32.mrf.mxu2  ;;  %v1385_v43 = vpop.f32.mrf.mxu3 }
 0x29b   : > { %v1345_v44 = vadd.f32 %v1344_v42, %v3164_v24  ;;  %v1265_v62 = vpop.f32.mrf.mxu0  ;;  %v1306_v1 = vpop.f32.mrf.mxu1 }
 0x29c   : > { %v1266_v2 = vadd.f32 %v1265_v62, %v3158_v34 }
 0x29d   : > { %v1386_v6 = vadd.f32 %v1385_v43, %v1345_v44 }
 0x29e   : > { %v1307_v14 = vadd.f32 %v1306_v1, %v1266_v2 }
 0x29f   : > { %1576 = vst [vmem:[%s3166_s25 + $0x48] sm:$0xff] %v1386_v6 }
 0x2a0   : > { %1579 = vst [vmem:[%s3166_s25 + $0x60] sm:$0xff] %v1307_v14 }
 0x2a2   : > { %v1347_v16 = vpop.f32.mrf.mxu2  ;;  %v1388_v18 = vpop.f32.mrf.mxu3 }
 0x2a3   : > { %v1348_v22 = vadd.f32 %v1347_v16, %v3164_v24  ;;  %v1268_v30 = vpop.f32.mrf.mxu0  ;;  %v1309_v38 = vpop.f32.mrf.mxu1 }
 0x2a4   : > { %v1269_v45 = vadd.f32 %v1268_v30, %v3158_v34 }
 0x2a5   : > { %v1389_v46 = vadd.f32 %v1388_v18, %v1348_v22 }
 0x2a6   : > { %v1310_v47 = vadd.f32 %v1309_v38, %v1269_v45 }
 0x2a7   : > { %1580 = vst [vmem:[%s3166_s25 + $0x68] sm:$0xff] %v1389_v46 }
 0x2a8   : > { %1583 = vst [vmem:[%s3166_s25 + $0x80] sm:$0xff] %v1310_v47 }
 0x2aa   : > { %v1350_v48 = vpop.f32.mrf.mxu2  ;;  %v1391_v49 = vpop.f32.mrf.mxu3 }
 0x2ab   : > { %v1351_v50 = vadd.f32 %v1350_v48, %v3164_v24  ;;  %v1271_v51 = vpop.f32.mrf.mxu0  ;;  %v1312_v57 = vpop.f32.mrf.mxu1 }
 0x2ac   : > { %v1272_v58 = vadd.f32 %v1271_v51, %v3158_v34 }
 0x2ad   : > { %v1392_v59 = vadd.f32 %v1391_v49, %v1351_v50 }
 0x2ae   : > { %v1313_v60 = vadd.f32 %v1312_v57, %v1272_v58 }
 0x2af   : > { %1584 = vst [vmem:[%s3166_s25 + $0x88] sm:$0xff] %v1392_v59 }
 0x2b0   : > { %1587 = vst [vmem:[%s3166_s25 + $0xa0] sm:$0xff] %v1313_v60 }
 0x2b2   : > { %v1353_v61 = vpop.f32.mrf.mxu2  ;;  %v1394_v63 = vpop.f32.mrf.mxu3 }
 0x2b3   : > { %v1354_v0 = vadd.f32 %v1353_v61, %v3164_v24  ;;  %v1274_v3 = vpop.f32.mrf.mxu0  ;;  %v1315_v4 = vpop.f32.mrf.mxu1 }
 0x2b4   : > { %v1275_v5 = vadd.f32 %v1274_v3, %v3158_v34 }
 0x2b5   : > { %v1395_v7 = vadd.f32 %v1394_v63, %v1354_v0 }
 0x2b6   : > { %v1316_v8 = vadd.f32 %v1315_v4, %v1275_v5 }
 0x2b7   : > { %1588 = vst [vmem:[%s3166_s25 + $0xa8] sm:$0xff] %v1395_v7 }
 0x2b8   : > { %1591 = vst [vmem:[%s3166_s25 + $0xc0] sm:$0xff] %v1316_v8 }
 0x2ba   : > { %v1356_v11 = vpop.f32.mrf.mxu2  ;;  %v1397_v13 = vpop.f32.mrf.mxu3 }
 0x2bb   : > { %v1357_v15 = vadd.f32 %v1356_v11, %v3164_v24  ;;  %v1277_v17 = vpop.f32.mrf.mxu0  ;;  %v1318_v19 = vpop.f32.mrf.mxu1 }
 0x2bc   : > { %v1278_v20 = vadd.f32 %v1277_v17, %v3158_v34 }
 0x2bd   : > { %v1398_v21 = vadd.f32 %v1397_v13, %v1357_v15 }
 0x2be   : > { %v1319_v23 = vadd.f32 %v1318_v19, %v1278_v20 }
 0x2bf   : > { %1592 = vst [vmem:[%s3166_s25 + $0xc8] sm:$0xff] %v1398_v21 }
 0x2c0   : > { %1595 = vst [vmem:[%s3166_s25 + $0xe0] sm:$0xff] %v1319_v23 }
 0x2c2   : > { %v1359_v53 = vpop.f32.mrf.mxu2  ;;  %v1400_v56 = vpop.f32.mrf.mxu3 }
 0x2c3   : > { %v1360_v9 = vadd.f32 %v1359_v53, %v3164_v24  ;;  %v1420_v10 = vpop.f32.mrf.mxu0  ;;  %v1461_v25 = vpop.f32.mrf.mxu1 }
 0x2c4   : > { %v1421_v54 = vadd.f32 %v1420_v10, %v3198_v55 }
 0x2c5   : > { %v1401_v26 = vadd.f32 %v1400_v56, %v1360_v9 }
 0x2c6   : > { %v1462_v34 = vadd.f32 %v1461_v25, %v1421_v54 }
 0x2c7   : > { %1596 = vst [vmem:[%s3166_s25 + $0xe8] sm:$0xff] %v1401_v26 }
 0x2c8   : > { %1569 = vst [vmem:[%s3166_s25 + $0x10] sm:$0xff] %v1462_v34 }
 0x2ca   : > { %v1502_v28 = vpop.f32.mrf.mxu2  ;;  %v1543_v29 = vpop.f32.mrf.mxu3 }
 0x2cb   : > { %v1503_v31 = vadd.f32 %v1502_v28, %v3204_v27  ;;  %v1423_v52 = vpop.f32.mrf.mxu0  ;;  %v1464_v24 = vpop.f32.mrf.mxu1 }
 0x2cc   : > { %v1424_v33 = vadd.f32 %v1423_v52, %v3198_v55 }
 0x2cd   : > { %v1544_v12 = vadd.f32 %v1543_v29, %v1503_v31 }
 0x2ce   : > { %v1465_v35 = vadd.f32 %v1464_v24, %v1424_v33 }
 0x2cf   : > { %1570 = vst [vmem:[%s3166_s25 + $0x18] sm:$0xff] %v1544_v12 }
 0x2d0   : > { %1573 = vst [vmem:[%s3166_s25 + $0x30] sm:$0xff] %v1465_v35 }
 0x2d2   : > { %v1505_v36 = vpop.f32.mrf.mxu2  ;;  %v1546_v37 = vpop.f32.mrf.mxu3 }
 0x2d3   : > { %v1506_v32 = vadd.f32 %v1505_v36, %v3204_v27  ;;  %v1426_v39 = vpop.f32.mrf.mxu0  ;;  %v1467_v40 = vpop.f32.mrf.mxu1 }
 0x2d4   : > { %v1427_v41 = vadd.f32 %v1426_v39, %v3198_v55 }
 0x2d5   : > { %v1547_v42 = vadd.f32 %v1546_v37, %v1506_v32 }
 0x2d6   : > { %v1468_v43 = vadd.f32 %v1467_v40, %v1427_v41 }
 0x2d7   : > { %1574 = vst [vmem:[%s3166_s25 + $0x38] sm:$0xff] %v1547_v42 }
 0x2d8   : > { %1577 = vst [vmem:[%s3166_s25 + $0x50] sm:$0xff] %v1468_v43 }
 0x2da   : > { %v1508_v44 = vpop.f32.mrf.mxu2  ;;  %v1549_v62 = vpop.f32.mrf.mxu3 }
 0x2db   : > { %v1509_v1 = vadd.f32 %v1508_v44, %v3204_v27  ;;  %v1429_v2 = vpop.f32.mrf.mxu0  ;;  %v1470_v6 = vpop.f32.mrf.mxu1 }
 0x2dc   : > { %v1430_v14 = vadd.f32 %v1429_v2, %v3198_v55 }
 0x2dd   : > { %v1550_v16 = vadd.f32 %v1549_v62, %v1509_v1 }
 0x2de   : > { %v1471_v18 = vadd.f32 %v1470_v6, %v1430_v14 }
 0x2df   : > { %1578 = vst [vmem:[%s3166_s25 + $0x58] sm:$0xff] %v1550_v16 }
 0x2e0   : > { %1581 = vst [vmem:[%s3166_s25 + $0x70] sm:$0xff] %v1471_v18 }
 0x2e2   : > { %v1511_v22 = vpop.f32.mrf.mxu2  ;;  %v1552_v30 = vpop.f32.mrf.mxu3 }
 0x2e3   : > { %v1512_v38 = vadd.f32 %v1511_v22, %v3204_v27  ;;  %v1432_v45 = vpop.f32.mrf.mxu0  ;;  %v1473_v46 = vpop.f32.mrf.mxu1 }
 0x2e4   : > { %v1433_v47 = vadd.f32 %v1432_v45, %v3198_v55 }
 0x2e5   : > { %v1553_v48 = vadd.f32 %v1552_v30, %v1512_v38 }
 0x2e6   : > { %v1474_v49 = vadd.f32 %v1473_v46, %v1433_v47 }
 0x2e7   : > { %1582 = vst [vmem:[%s3166_s25 + $0x78] sm:$0xff] %v1553_v48 }
 0x2e8   : > { %1585 = vst [vmem:[%s3166_s25 + $0x90] sm:$0xff] %v1474_v49 }
 0x2ea   : > { %v1514_v50 = vpop.f32.mrf.mxu2  ;;  %v1555_v51 = vpop.f32.mrf.mxu3 }
 0x2eb   : > { %v1515_v57 = vadd.f32 %v1514_v50, %v3204_v27  ;;  %v1435_v58 = vpop.f32.mrf.mxu0  ;;  %v1476_v59 = vpop.f32.mrf.mxu1 }
 0x2ec   : > { %v1436_v60 = vadd.f32 %v1435_v58, %v3198_v55 }
 0x2ed   : > { %v1556_v61 = vadd.f32 %v1555_v51, %v1515_v57 }
 0x2ee   : > { %v1477_v63 = vadd.f32 %v1476_v59, %v1436_v60 }
 0x2ef   : > { %1586 = vst [vmem:[%s3166_s25 + $0x98] sm:$0xff] %v1556_v61 }
 0x2f0   : > { %1589 = vst [vmem:[%s3166_s25 + $0xb0] sm:$0xff] %v1477_v63 }
 0x2f2   : > { %v1517_v0 = vpop.f32.mrf.mxu2  ;;  %v1558_v3 = vpop.f32.mrf.mxu3 }
 0x2f3   : > { %v1518_v4 = vadd.f32 %v1517_v0, %v3204_v27  ;;  %v1438_v5 = vpop.f32.mrf.mxu0  ;;  %v1479_v7 = vpop.f32.mrf.mxu1 }
 0x2f4   : > { %v1439_v8 = vadd.f32 %v1438_v5, %v3198_v55 }
 0x2f5   : > { %v1559_v11 = vadd.f32 %v1558_v3, %v1518_v4 }
 0x2f6   : > { %v1480_v13 = vadd.f32 %v1479_v7, %v1439_v8 }
 0x2f7   : > { %1590 = vst [vmem:[%s3166_s25 + $0xb8] sm:$0xff] %v1559_v11 }
 0x2f8   : > { %1593 = vst [vmem:[%s3166_s25 + $0xd0] sm:$0xff] %v1480_v13 }
 0x2fa   : > { %v1520_v15 = vpop.f32.mrf.mxu2  ;;  %v1561_v17 = vpop.f32.mrf.mxu3 }
 0x2fb   : > { %v1521_v19 = vadd.f32 %v1520_v15, %v3204_v27  ;;  %v1441_v20 = vpop.f32.mrf.mxu0  ;;  %v1482_v53 = vpop.f32.mrf.mxu1 }
 0x2fc   : > { %v1442_v21 = vadd.f32 %v1441_v20, %v3198_v55 }
 0x2fd   : > { %v1562_v23 = vadd.f32 %v1561_v17, %v1521_v19 }
 0x2fe   : > { %v1483_v56 = vadd.f32 %v1482_v53, %v1442_v21 }
 0x2ff   : > { %1594 = vst [vmem:[%s3166_s25 + $0xd8] sm:$0xff] %v1562_v23 }
 0x300   : > { %1597 = vst [vmem:[%s3166_s25 + $0xf0] sm:$0xff] %v1483_v56 }
 0x302   : > { %v1523_v9 = vpop.f32.mrf.mxu2  ;;  %v1564_v25 = vpop.f32.mrf.mxu3 }
 0x303   : > { %v1524_v10 = vadd.f32 %v1523_v9, %v3204_v27 }
 0x305   : > { %v1565_v55 = vadd.f32 %v1564_v25, %v1524_v10 }
 0x307   : > { %1598 = vst [vmem:[%s3166_s25 + $0xf8] sm:$0xff] %v1565_v55 }
 0x308   : > { %1764 = shalt.err (!%p1761_p3)
}
 0x309   : > { %s1801_s21 = smov 512   ;;  %s1802_s25 = smov 32  }
 0x30a   : > { %1695 = dma.vmem_to_hbm [thread:$0]  (%p1891_p5), %s1614_s27, 4096, %s1616_s29, %s1600_s13, %s1801_s21, %s1801_s21, %s1802_s25  }
 0x30b PF: > { %p1701_p4 = scmp.ge.s32.totalorder %s1799_s12, 2  ;;  %s1630_s26 = sand.u32 1, %s1787_s30  }
 0x30c   : > { %s1631_s17 = scalar_lea.sflag [#allocation3], %s1630_s26 }
 0x30d   : > { %p1698_p7 = pnand %p1701_p4, %p1895_p6 }
 0x30f   : > { %p1699_p8 = pneg %p1698_p7 }
 0x311   : > { %1782 = dma.done.wait (%p1699_p8), %s1631_s17, 4096  }
 0x312   : > { %1784 = vsyncadd (%p1699_p8), %s1631_s17, 4294963200  ;;  %p19_p9 = scmp.ge.s32.totalorder %s1878_s15, 6   ;;  %s3284_s30 = smov %s1791_s10 }
 0x313   : > { %s3285_s10 = smov %s1795_s11  ;;  %s3286_s11 = smov %s1889_s18 }
 0x314   : > { %s3287_s12 = smov %s1878_s15  ;;  %21 = sbr.rel (!%p19_p9) target bundleno = 3 (0x3), region = 91 }
 0x319   :  { %1637 = vsyncpa [#allocation3], 1 }
 0x31a   :  { %1639 = vsyncpa [#allocation3 + $0x1], 1 }

</bundles_post_ra>
